<compile_context>
chip_gen: v7x
topology: tpu7x:2x2x1
jax: 0.10.0
libtpu: 0.0.40
codegen_flags: <defaults>
</compile_context>

<pallas_src>
import jax
import jax.numpy as jnp
from jax.experimental import pallas as pl
from jax.experimental.pallas import tpu as pltpu


# --------------------------------------------------------------------------- #
# Kernel
# --------------------------------------------------------------------------- #
def stackcoder_kernel(
    x_ref,
    w_pre_ref, b_pre_ref,
    w1_ref, b1_ref,
    w_enc_ref, b_enc_ref,
    w_dec_ref, b_dec_ref,
    w2_ref, b2_ref,
    out_ref,
):
    compute_dtype = w_pre_ref.dtype  # bf16 on the hot path

    def layer(a, w_ref, b_ref):
        # bf16 x bf16 -> f32 accumulation on the MXU, bias add in f32.
        acc = jnp.dot(a, w_ref[...], preferred_element_type=jnp.float32)
        return acc + b_ref[...]

    x = x_ref[...].astype(compute_dtype)
    h = layer(x, w_pre_ref, b_pre_ref)
    t = layer(h.astype(compute_dtype), w1_ref, b1_ref)
    e = layer(t.astype(compute_dtype), w_enc_ref, b_enc_ref)
    d = layer(e.astype(compute_dtype), w_dec_ref, b_dec_ref)
    y = layer(d.astype(compute_dtype), w2_ref, b2_ref)
    out_ref[...] = y.astype(out_ref.dtype)


# --------------------------------------------------------------------------- #
# Launch wrapper
# --------------------------------------------------------------------------- #
def _pick_tile_b(batch, sublane):
    """Largest batch tile <= 512 that is sublane-aligned and gives >= 2 grid steps."""
    if batch % sublane != 0:
        return batch  # full-array block is always legal
    for cand in (512, 256, 128, 64, 32, 16, 8):
        if cand % sublane == 0 and batch % cand == 0 and batch // cand >= 2:
            return cand
    return batch  # tiny batch: weight-HBM bound anyway, grid=1 is fine


def stackcoder_forward(x, params, *, tile_b=None):
    """Runs the flag=-1 forward pass of StackCoder via pallas_call."""
    B, D = x.shape
    (w_pre, b_pre, w1, b1, w_enc, b_enc, w_dec, b_dec, w2, b2) = params
    input_dim = w_pre.shape[1]
    hidden = w1.shape[1]
    out_dtype = jnp.float32

    sublane = 16 if w_pre.dtype == jnp.bfloat16 else 8
    if tile_b is None:
        tile_b = _pick_tile_b(B, sublane)
    assert B % tile_b == 0, "batch must be divisible by tile_b"
    assert tile_b == B or tile_b % sublane == 0, (
        "tile_b must be a multiple of the sublane size or equal to the batch")

    grid = (B // tile_b,)
    weight_args = (w_pre, b_pre, w1, b1, w_enc, b_enc, w_dec, b_dec, w2, b2)

    # Weights/biases: constant index_map -> keep exactly one resident copy
    # (the default second pipeline buffer would be pure wasted VMEM).
    def weight_spec(arr):
        return pl.BlockSpec(
            arr.shape,
            lambda i: tuple(0 for _ in arr.shape),
            pipeline_mode=pl.Buffered(1),
        )

    # VMEM budget: single-buffered params, double-buffered x/out tiles,
    # f32 intermediates; headroom, capped below v7x's 64 MiB physical VMEM.
    param_bytes = sum(int(p.size) * p.dtype.itemsize for p in weight_args)
    act_bytes = tile_b * (
        2 * D * x.dtype.itemsize      # x tile, double-buffered
        + 2 * input_dim * 4           # out tile (f32), double-buffered
        + 2 * hidden * 4              # f32 intermediates inside the body
    )
    vmem_limit = int(min(2 * param_bytes + 2 * act_bytes + (8 << 20), 56 << 20))

    flops = 2 * B * sum(w.shape[0] * w.shape[1] for w in weight_args[0::2])
    bytes_accessed = (
        param_bytes
        + int(x.size) * x.dtype.itemsize
        + B * input_dim * 4
    )

    return pl.pallas_call(
        stackcoder_kernel,
        out_shape=jax.ShapeDtypeStruct((B, input_dim), out_dtype),
        grid_spec=pltpu.PrefetchScalarGridSpec(
            num_scalar_prefetch=0,
            grid=grid,
            in_specs=[pl.BlockSpec((tile_b, D), lambda i: (i, 0))]
            + [weight_spec(a) for a in weight_args],
            out_specs=pl.BlockSpec((tile_b, input_dim), lambda i: (i, 0)),
        ),
        compiler_params=pltpu.CompilerParams(
            dimension_semantics=("parallel",),
            vmem_limit_bytes=vmem_limit,
        ),
        cost_estimate=pl.CostEstimate(
            flops=flops, transcendentals=0, bytes_accessed=bytes_accessed),
    )(x, *weight_args)


# --------------------------------------------------------------------------- #
# Parameters + reference
# --------------------------------------------------------------------------- #
def init_params(key, data_dim, input_dim, output_dim, *, weight_dtype=jnp.bfloat16):
    """Deterministic synthetic params. Weights (in, out) in bf16; biases f32."""
    hidden = 4 * output_dim
    dims = [
        (data_dim, input_dim),   # pre_fc
        (input_dim, hidden),     # fc1
        (hidden, output_dim),    # auto_coder.encoder
        (output_dim, hidden),    # auto_coder.decoder
        (hidden, input_dim),     # fc2
    ]
    params = []
    for (d_in, d_out) in dims:
        key, kw, kb = jax.random.split(key, 3)
        scale = 1.0 / jnp.sqrt(jnp.float32(d_in))
        w = (jax.random.normal(kw, (d_in, d_out), jnp.float32) * scale).astype(weight_dtype)
        b = jax.random.normal(kb, (1, d_out), jnp.float32) * scale  # f32 bias
        params += [w, b]
    return tuple(params)


def stackcoder_ref(x, params):
    """Pure-JAX reference following the same dtype path as the kernel."""
    (w_pre, b_pre, w1, b1, w_enc, b_enc, w_dec, b_dec, w2, b2) = params

    def layer(a, w, b):
        return jnp.dot(a.astype(w.dtype), w,
                       preferred_element_type=jnp.float32) + b

    h = layer(x, w_pre, b_pre)
    t = layer(h, w1, b1)
    e = layer(t, w_enc, b_enc)
    d = layer(e, w_dec, b_dec)
    return layer(d, w2, b2)


# --------------------------------------------------------------------------- #
# Smoke test
# --------------------------------------------------------------------------- #
if __name__ == "__main__":
    # Small, lane-friendly config (real module defaults are 1024/128):
    # all feature dims are multiples of 128 so stores stay lane-dense, and
    # batch=256 with tile_b=128 gives a 2-step "parallel" grid.
    batch, data_dim, input_dim, output_dim = 256, 128, 256, 128

    key = jax.random.PRNGKey(0)
    kx, kp = jax.random.split(key)
    x = jax.random.normal(kx, (batch, data_dim), jnp.float32).astype(jnp.bfloat16)
    params = init_params(kp, data_dim, input_dim, output_dim)

    out = jax.block_until_ready(stackcoder_forward(x, params))
    ref = stackcoder_ref(x, params)

    assert out.shape == (batch, input_dim)
    assert out.dtype == jnp.float32
    assert jnp.allclose(out, ref, atol=1e-2, rtol=1e-2), float(
        jnp.max(jnp.abs(out - ref)))

    print("KERNEL_OK")
</pallas_src>

<mosaic_0001>
module attributes {stable_mosaic.version = 11 : i64} {
  func.func @stackcoder_kernel(%arg0: i32, %arg1: memref<128x128xbf16, #tpu.memory_space<vmem>>, %arg2: memref<128x256xbf16, #tpu.memory_space<vmem>>, %arg3: memref<1x256xf32, #tpu.memory_space<vmem>>, %arg4: memref<256x512xbf16, #tpu.memory_space<vmem>>, %arg5: memref<1x512xf32, #tpu.memory_space<vmem>>, %arg6: memref<512x128xbf16, #tpu.memory_space<vmem>>, %arg7: memref<1x128xf32, #tpu.memory_space<vmem>>, %arg8: memref<128x512xbf16, #tpu.memory_space<vmem>>, %arg9: memref<1x512xf32, #tpu.memory_space<vmem>>, %arg10: memref<512x256xbf16, #tpu.memory_space<vmem>>, %arg11: memref<1x256xf32, #tpu.memory_space<vmem>>, %arg12: memref<128x256xf32, #tpu.memory_space<vmem>>) attributes {dimension_semantics = [#tpu.dimension_semantics<parallel>], iteration_bounds = array<i64: 2>, scalar_prefetch = 0 : i64, scratch_operands = 0 : i64, tpu.core_type = #tpu.core_type<tc>, window_params = [{transform_indices = @transform_0, window_bounds = array<i64: 128, 128>}, {pipeline_mode = #tpu.pipeline_mode<synchronous>, transform_indices = @transform_1, window_bounds = array<i64: 128, 256>}, {pipeline_mode = #tpu.pipeline_mode<synchronous>, transform_indices = @transform_2, window_bounds = array<i64: 1, 256>}, {pipeline_mode = #tpu.pipeline_mode<synchronous>, transform_indices = @transform_3, window_bounds = array<i64: 256, 512>}, {pipeline_mode = #tpu.pipeline_mode<synchronous>, transform_indices = @transform_4, window_bounds = array<i64: 1, 512>}, {pipeline_mode = #tpu.pipeline_mode<synchronous>, transform_indices = @transform_5, window_bounds = array<i64: 512, 128>}, {pipeline_mode = #tpu.pipeline_mode<synchronous>, transform_indices = @transform_6, window_bounds = array<i64: 1, 128>}, {pipeline_mode = #tpu.pipeline_mode<synchronous>, transform_indices = @transform_7, window_bounds = array<i64: 128, 512>}, {pipeline_mode = #tpu.pipeline_mode<synchronous>, transform_indices = @transform_8, window_bounds = array<i64: 1, 512>}, {pipeline_mode = #tpu.pipeline_mode<synchronous>, transform_indices = @transform_9, window_bounds = array<i64: 512, 256>}, {pipeline_mode = #tpu.pipeline_mode<synchronous>, transform_indices = @transform_10, window_bounds = array<i64: 1, 256>}, {transform_indices = @transform_11, window_bounds = array<i64: 128, 256>}]} {
    %c0 = arith.constant 0 : index
    %c0_0 = arith.constant 0 : index
    %0 = vector.load %arg1[%c0, %c0_0] : memref<128x128xbf16, #tpu.memory_space<vmem>>, vector<128x128xbf16>
    %c0_1 = arith.constant 0 : index
    %c0_2 = arith.constant 0 : index
    %1 = vector.load %arg2[%c0_1, %c0_2] : memref<128x256xbf16, #tpu.memory_space<vmem>>, vector<128x256xbf16>
    %cst = arith.constant dense<0.000000e+00> : vector<128x256xf32>
    %2 = tpu.matmul %0, %1, %cst {dimension_numbers = #tpu.dot_dimension_numbers<[1], [0], [0], [1], [0, 0, 1, 1], [], []>} : vector<128x128xbf16>, vector<128x256xbf16>, vector<128x256xf32> -> vector<128x256xf32>
    %c0_3 = arith.constant 0 : index
    %c0_4 = arith.constant 0 : index
    %3 = vector.load %arg3[%c0_3, %c0_4] : memref<1x256xf32, #tpu.memory_space<vmem>>, vector<1x256xf32>
    %4 = vector.broadcast %3 : vector<1x256xf32> to vector<128x256xf32>
    %5 = arith.addf %2, %4 : vector<128x256xf32>
    %6 = arith.truncf %5 : vector<128x256xf32> to vector<128x256xbf16>
    %c0_5 = arith.constant 0 : index
    %c0_6 = arith.constant 0 : index
    %7 = vector.load %arg4[%c0_5, %c0_6] : memref<256x512xbf16, #tpu.memory_space<vmem>>, vector<256x512xbf16>
    %cst_7 = arith.constant dense<0.000000e+00> : vector<128x512xf32>
    %8 = tpu.matmul %6, %7, %cst_7 {dimension_numbers = #tpu.dot_dimension_numbers<[1], [0], [0], [1], [0, 0, 1, 1], [], []>} : vector<128x256xbf16>, vector<256x512xbf16>, vector<128x512xf32> -> vector<128x512xf32>
    %c0_8 = arith.constant 0 : index
    %c0_9 = arith.constant 0 : index
    %9 = vector.load %arg5[%c0_8, %c0_9] : memref<1x512xf32, #tpu.memory_space<vmem>>, vector<1x512xf32>
    %10 = vector.broadcast %9 : vector<1x512xf32> to vector<128x512xf32>
    %11 = arith.addf %8, %10 : vector<128x512xf32>
    %12 = arith.truncf %11 : vector<128x512xf32> to vector<128x512xbf16>
    %c0_10 = arith.constant 0 : index
    %c0_11 = arith.constant 0 : index
    %13 = vector.load %arg6[%c0_10, %c0_11] : memref<512x128xbf16, #tpu.memory_space<vmem>>, vector<512x128xbf16>
    %cst_12 = arith.constant dense<0.000000e+00> : vector<128x128xf32>
    %14 = tpu.matmul %12, %13, %cst_12 {dimension_numbers = #tpu.dot_dimension_numbers<[1], [0], [0], [1], [0, 0, 1, 1], [], []>} : vector<128x512xbf16>, vector<512x128xbf16>, vector<128x128xf32> -> vector<128x128xf32>
    %c0_13 = arith.constant 0 : index
    %c0_14 = arith.constant 0 : index
    %15 = vector.load %arg7[%c0_13, %c0_14] : memref<1x128xf32, #tpu.memory_space<vmem>>, vector<1x128xf32>
    %16 = vector.broadcast %15 : vector<1x128xf32> to vector<128x128xf32>
    %17 = arith.addf %14, %16 : vector<128x128xf32>
    %18 = arith.truncf %17 : vector<128x128xf32> to vector<128x128xbf16>
    %c0_15 = arith.constant 0 : index
    %c0_16 = arith.constant 0 : index
    %19 = vector.load %arg8[%c0_15, %c0_16] : memref<128x512xbf16, #tpu.memory_space<vmem>>, vector<128x512xbf16>
    %cst_17 = arith.constant dense<0.000000e+00> : vector<128x512xf32>
    %20 = tpu.matmul %18, %19, %cst_17 {dimension_numbers = #tpu.dot_dimension_numbers<[1], [0], [0], [1], [0, 0, 1, 1], [], []>} : vector<128x128xbf16>, vector<128x512xbf16>, vector<128x512xf32> -> vector<128x512xf32>
    %c0_18 = arith.constant 0 : index
    %c0_19 = arith.constant 0 : index
    %21 = vector.load %arg9[%c0_18, %c0_19] : memref<1x512xf32, #tpu.memory_space<vmem>>, vector<1x512xf32>
    %22 = vector.broadcast %21 : vector<1x512xf32> to vector<128x512xf32>
    %23 = arith.addf %20, %22 : vector<128x512xf32>
    %24 = arith.truncf %23 : vector<128x512xf32> to vector<128x512xbf16>
    %c0_20 = arith.constant 0 : index
    %c0_21 = arith.constant 0 : index
    %25 = vector.load %arg10[%c0_20, %c0_21] : memref<512x256xbf16, #tpu.memory_space<vmem>>, vector<512x256xbf16>
    %cst_22 = arith.constant dense<0.000000e+00> : vector<128x256xf32>
    %26 = tpu.matmul %24, %25, %cst_22 {dimension_numbers = #tpu.dot_dimension_numbers<[1], [0], [0], [1], [0, 0, 1, 1], [], []>} : vector<128x512xbf16>, vector<512x256xbf16>, vector<128x256xf32> -> vector<128x256xf32>
    %c0_23 = arith.constant 0 : index
    %c0_24 = arith.constant 0 : index
    %27 = vector.load %arg11[%c0_23, %c0_24] : memref<1x256xf32, #tpu.memory_space<vmem>>, vector<1x256xf32>
    %28 = vector.broadcast %27 : vector<1x256xf32> to vector<128x256xf32>
    %29 = arith.addf %26, %28 : vector<128x256xf32>
    %c0_25 = arith.constant 0 : index
    %c0_26 = arith.constant 0 : index
    %30 = vector.load %arg12[%c0_25, %c0_26] : memref<128x256xf32, #tpu.memory_space<vmem>>, vector<128x256xf32>
    tpu.vector_store %arg12[%c0_25, %c0_26], %29 {strides = array<i32>} : memref<128x256xf32, #tpu.memory_space<vmem>>, vector<128x256xf32>,
    return
  }
  func.func @transform_0(%arg0: i32) -> (i32, i32) {
    %c0_i32 = arith.constant 0 : i32
    %c0_i32_0 = arith.constant 0 : i32
    return %arg0, %c0_i32 : i32, i32
  }
  func.func @transform_1(%arg0: i32) -> (i32, i32) {
    %c0_i32 = arith.constant 0 : i32
    %c0_i32_0 = arith.constant 0 : i32
    %c0_i32_1 = arith.constant 0 : i32
    return %c0_i32, %c0_i32_0 : i32, i32
  }
  func.func @transform_2(%arg0: i32) -> (i32, i32) {
    %c0_i32 = arith.constant 0 : i32
    %c0_i32_0 = arith.constant 0 : i32
    %c0_i32_1 = arith.constant 0 : i32
    return %c0_i32, %c0_i32_0 : i32, i32
  }
  func.func @transform_3(%arg0: i32) -> (i32, i32) {
    %c0_i32 = arith.constant 0 : i32
    %c0_i32_0 = arith.constant 0 : i32
    %c0_i32_1 = arith.constant 0 : i32
    return %c0_i32, %c0_i32_0 : i32, i32
  }
  func.func @transform_4(%arg0: i32) -> (i32, i32) {
    %c0_i32 = arith.constant 0 : i32
    %c0_i32_0 = arith.constant 0 : i32
    %c0_i32_1 = arith.constant 0 : i32
    return %c0_i32, %c0_i32_0 : i32, i32
  }
  func.func @transform_5(%arg0: i32) -> (i32, i32) {
    %c0_i32 = arith.constant 0 : i32
    %c0_i32_0 = arith.constant 0 : i32
    %c0_i32_1 = arith.constant 0 : i32
    return %c0_i32, %c0_i32_0 : i32, i32
  }
  func.func @transform_6(%arg0: i32) -> (i32, i32) {
    %c0_i32 = arith.constant 0 : i32
    %c0_i32_0 = arith.constant 0 : i32
    %c0_i32_1 = arith.constant 0 : i32
    return %c0_i32, %c0_i32_0 : i32, i32
  }
  func.func @transform_7(%arg0: i32) -> (i32, i32) {
    %c0_i32 = arith.constant 0 : i32
    %c0_i32_0 = arith.constant 0 : i32
    %c0_i32_1 = arith.constant 0 : i32
    return %c0_i32, %c0_i32_0 : i32, i32
  }
  func.func @transform_8(%arg0: i32) -> (i32, i32) {
    %c0_i32 = arith.constant 0 : i32
    %c0_i32_0 = arith.constant 0 : i32
    %c0_i32_1 = arith.constant 0 : i32
    return %c0_i32, %c0_i32_0 : i32, i32
  }
  func.func @transform_9(%arg0: i32) -> (i32, i32) {
    %c0_i32 = arith.constant 0 : i32
    %c0_i32_0 = arith.constant 0 : i32
    %c0_i32_1 = arith.constant 0 : i32
    return %c0_i32, %c0_i32_0 : i32, i32
  }
  func.func @transform_10(%arg0: i32) -> (i32, i32) {
    %c0_i32 = arith.constant 0 : i32
    %c0_i32_0 = arith.constant 0 : i32
    %c0_i32_1 = arith.constant 0 : i32
    return %c0_i32, %c0_i32_0 : i32, i32
  }
  func.func @transform_11(%arg0: i32) -> (i32, i32) {
    %c0_i32 = arith.constant 0 : i32
    %c0_i32_0 = arith.constant 0 : i32
    return %arg0, %c0_i32 : i32, i32
  }
}

</mosaic_0001>

<bundles_post_ra>
// kernel: tpu_custom_call.1
= control target key start
LH: loop header
LB: loop body
LE: loop exit
PB: predicated region body
PF: predicated region fallthrough
CT: control target
= control target key end

     0   :  { %s5160_s0 = inlined_call_operand.hbm [shape: bf16[256,128], index: 0, kind: input, shape index: {}]   ;;  %s5161_s1 = inlined_call_operand.hbm [shape: bf16[128,256], index: 1, kind: input, shape index: {}]   ;;  %s5162_s2 = inlined_call_operand.vmem [shape: f32[1,256], index: 2, kind: input, shape index: {}]   ;;  %s5163_s3 = inlined_call_operand.hbm [shape: bf16[256,512], index: 3, kind: input, shape index: {}]   ;;  %s5164_s4 = inlined_call_operand.vmem [shape: f32[1,512], index: 4, kind: input, shape index: {}]   ;;  %s5165_s5 = inlined_call_operand.hbm [shape: bf16[512,128], index: 5, kind: input, shape index: {}]   ;;  %s5166_s6 = inlined_call_operand.vmem [shape: f32[1,128], index: 6, kind: input, shape index: {}]   ;;  %s5167_s7 = inlined_call_operand.hbm [shape: bf16[128,512], index: 7, kind: input, shape index: {}]   ;;  %s5168_s8 = inlined_call_operand.vmem [shape: f32[1,512], index: 8, kind: input, shape index: {}]   ;;  %s5169_s9 = inlined_call_operand.hbm [shape: bf16[512,256], index: 9, kind: input, shape index: {}]   ;;  %s5170_s10 = inlined_call_operand.vmem [shape: f32[1,256], index: 10, kind: input, shape index: {}]   ;;  %s5171_s11 = inlined_call_operand.hbm [shape: f32[256,256], index: 11, kind: output, shape index: {}]  }
   0x1   :  { %5180 = sst [smem:[#allocation19_spill]] %s5161_s1 }
   0x2   :  { %5181 = sst [smem:[#allocation20_spill]] %s5165_s5 }
   0x3   :  { %5182 = sst [smem:[#allocation21_spill]] %s5168_s8 }
   0x4   :  { %5183 = sst [smem:[#allocation22_spill]] %s5170_s10 }
   0x5   :  { %5184 = sst [smem:[#allocation23_spill]] %s5171_s11 }
   0x6   :  { %16 = vsyncpa [#allocation3], 0 }
   0x7   :  { %18 = vsyncpa [#allocation3 + $0x1], 0 }
   0x8   :  { %19 = vsyncpa [#allocation6], 0 }
   0x9   :  { %20 = vsyncpa [#allocation9], 0 }
   0xa   :  { %21 = vsyncpa [#allocation12], 0 }
   0xb   :  { %22 = vsyncpa [#allocation4], 0 }
   0xc   :  { %24 = vsyncpa [#allocation4 + $0x1], 0  ;;  %s4378_s17 = smov 0   ;;  %s4380_s18 = smov 0  }
   0xd   :  { %s4382_s19 = smov 0   ;;  %s4384_s20 = smov 0  }
   0xe LB: > { %s4302_s21 = smov [#allocation5]   ;;  %s4399_s23 = sadd.s32 4294967295, %s4300_s20   ;;  %s4300_s20 = sphi %s4384_s20, %s5215_s20   ;;  %s4296_s19 = sphi %s4382_s19, %s5214_s19   ;;  %s4292_s18 = sphi %s4380_s18, %s5213_s18   ;;  %s4288_s17 = sphi %s4378_s17, %s5212_s17  }
   0xf   : > { %s309_s22 = sshll.u32 %s4302_s21, 4  ;;  %p3174_p0 = scmp.ge.s32.totalorder %s4300_s20, 1  ;;  %s4404_s22 = int_to_ptr.vmem [resolvable:$true] %s309_s22 }
  0x10   : > { %p5174_p1 = scmp.eq.s32.totalorder %s4399_s23, 0  ;;  %p297_p2 = scmp.lt.s32.totalorder %s4300_s20, 3 }
  0x11   : > { %s4303_s25 = smov [#allocation8]   ;;  %s4304_s28 = smov [#allocation7]  }
  0x12   : > { %p4406_p3 = pnand %p3174_p0, %p297_p2  ;;  %s341_s26 = sshll.u32 %s4303_s25, 4  ;;  %s4419_s26 = int_to_ptr.vmem [resolvable:$true] %s341_s26 }
  0x13   : > { %s4421_s29 = sshll.u32 %s4304_s28, 4  ;;  %s5187_s1 = sld [smem:[#allocation19_spill]]  ;;  %s326_s29 = int_to_ptr.vmem [resolvable:$true] %s4421_s29 }
  0x14   : > { %s5185_s24 = scalar_select %p4406_p3, 1, 0 }
  0x15   : > { %p3666_p5 = pneg %p4406_p3 }
  0x17   : > { %p4415_p6 = pnand %p3666_p5, %p5174_p1 }
  0x19   : > { %s4052_s13 = scalar_lea.hbm %s5187_s1, 2048  ;;  %p4431_p8 = pneg %p4415_p6 }
  0x1a   : > { %p4053_p7 = scmp.ne.s32.totalorder %s5187_s1, %s4052_s13  ;;  %p4059_p11 = scmp.lt.u32.totalorder %s4052_s13, %s5187_s1 }
  0x1c   : > { %p4055_p9 = pnand %p4431_p8, %p4053_p7 }
  0x1e   : > { %p4056_p10 = pneg %p4055_p9 }
  0x20   : > { %p4061_p12 = pnand %p4059_p11, %p4056_p10 }
  0x22   : > { %4064 = shalt.err (!%p4061_p12)
}
  0x23   : > { %s4065_s28 = scalar_lea.vmem %s4404_s22, 2048  ;;  %p4073_p5 = scmp.lt.s32.totalorder %s4404_s22, %s4404_s22 }
  0x24   : > { %p4066_p13 = scmp.ne.s32.totalorder %s4404_s22, %s4065_s28  ;;  %p4074_p4 = scmp.lt.s32.totalorder %s4065_s28, %s4065_s28 }
  0x26   : > { %p4068_p0 = pnand %p4066_p13, %p4431_p8  ;;  %p4075_p7 = por %p4074_p4, %p4073_p5 }
  0x28   : > { %p4069_p2 = pneg %p4068_p0 }
  0x2a   : > { %p4076_p9 = pnand %p4075_p7, %p4069_p2 }
  0x2c   : > { %4079 = shalt.err (!%p4076_p9)
}
  0x2d   : > { %s5173_s30 = smov 128   ;;  %s5178_s12 = smov 8  }
  0x2e   : > { %3669 = dma.hbm_to_vmem [thread:$0]  (!%p4415_p6), %s5187_s1, 2048, %s4404_s22, [#allocation6], %s5173_s30, %s5173_s30, %s5178_s12  }
  0x2f   : > { %s5189_s5 = sld [smem:[#allocation20_spill]] }
  0x35   : > { %s4080_s25 = scalar_lea.hbm %s5189_s5, 4096 }
  0x36   : > { %p4081_p4 = scmp.ne.s32.totalorder %s5189_s5, %s4080_s25  ;;  %p4087_p12 = scmp.lt.u32.totalorder %s4080_s25, %s5189_s5 }
  0x38   : > { %p4083_p10 = pnand %p4081_p4, %p4431_p8 }
  0x3a   : > { %p4084_p11 = pneg %p4083_p10 }
  0x3c   : > { %p4089_p13 = pnand %p4087_p12, %p4084_p11 }
  0x3e   : > { %4092 = shalt.err (!%p4089_p13)
}
  0x3f   : > { %s4093_s22 = scalar_lea.vmem %s4419_s26, 4096  ;;  %p4101_p7 = scmp.lt.s32.totalorder %s4419_s26, %s4419_s26 }
  0x40   : > { %p4094_p0 = scmp.ne.s32.totalorder %s4419_s26, %s4093_s22  ;;  %p4102_p9 = scmp.lt.s32.totalorder %s4093_s22, %s4093_s22 }
  0x42   : > { %p4096_p2 = pnand %p4094_p0, %p4431_p8  ;;  %p4103_p4 = por %p4102_p9, %p4101_p7 }
  0x44   : > { %p4097_p5 = pneg %p4096_p2 }
  0x46   : > { %p4104_p10 = pnand %p4103_p4, %p4097_p5 }
  0x48   : > { %4107 = shalt.err (!%p4104_p10)
}
  0x49   : > { %s5176_s11 = smov 64   ;;  %s5177_s8 = smov 4  }
  0x4a   : > { %3675 = dma.hbm_to_vmem [thread:$0]  (!%p4415_p6), %s5189_s5, 4096, %s4419_s26, [#allocation9], %s5176_s11, %s5176_s11, %s5177_s8  }
  0x4b   : > { %s4108_s21 = scalar_lea.hbm %s5163_s3, 8192 }
  0x4c   : > { %p4109_p11 = scmp.ne.s32.totalorder %s5163_s3, %s4108_s21  ;;  %p4115_p0 = scmp.lt.u32.totalorder %s4108_s21, %s5163_s3 }
  0x4e   : > { %p4111_p12 = pnand %p4109_p11, %p4431_p8 }
  0x50   : > { %p4112_p13 = pneg %p4111_p12 }
  0x52   : > { %p4117_p2 = pnand %p4115_p0, %p4112_p13 }
  0x54   : > { %4120 = shalt.err (!%p4117_p2)
}
  0x55   : > { %s4121_s10 = scalar_lea.vmem %s326_s29, 8192  ;;  %p4129_p4 = scmp.lt.s32.totalorder %s326_s29, %s326_s29 }
  0x56   : > { %p4122_p5 = scmp.ne.s32.totalorder %s326_s29, %s4121_s10  ;;  %p4130_p10 = scmp.lt.s32.totalorder %s4121_s10, %s4121_s10 }
  0x58   : > { %p4124_p7 = pnand %p4122_p5, %p4431_p8  ;;  %p4131_p1 = por %p4130_p10, %p4129_p4 }
  0x5a   : > { %p4125_p9 = pneg %p4124_p7 }
  0x5c   : > { %p4132_p3 = pnand %p4131_p1, %p4125_p9 }
  0x5e   : > { %4135 = shalt.err (!%p4132_p3)
}
  0x5f   : > { %s4309_s26 = smov 256   ;;  %s4310_s13 = smov 16  }
  0x60   : > { %3672 = dma.hbm_to_vmem [thread:$0]  (!%p4415_p6), %s5163_s3, 8192, %s326_s29, [#allocation6], %s4309_s26, %s4309_s26, %s4310_s13  }
  0x61   : > { %s4311_s15 = smov [#allocation10]   ;;  %s4312_s25 = smov [#allocation11]  }
  0x62   : > { %s357_s21 = sshll.u32 %s4311_s15, 4  ;;  %s373_s28 = sshll.u32 %s4312_s25, 4  ;;  %s358_s21 = int_to_ptr.vmem [resolvable:$true] %s357_s21  ;;  %s374_s28 = int_to_ptr.vmem [resolvable:$true] %s373_s28 }
  0x63   : > { %s4136_s10 = scalar_lea.hbm %s5167_s7, 4096 }
  0x64   : > { %p4137_p1 = scmp.ne.s32.totalorder %s5167_s7, %s4136_s10  ;;  %p4143_p12 = scmp.lt.u32.totalorder %s4136_s10, %s5167_s7 }
  0x66   : > { %p4139_p3 = pnand %p4137_p1, %p4431_p8 }
  0x68   : > { %p4140_p11 = pneg %p4139_p3 }
  0x6a   : > { %p4145_p13 = pnand %p4143_p12, %p4140_p11 }
  0x6c   : > { %4148 = shalt.err (!%p4145_p13)
}
  0x6d   : > { %s4149_s29 = scalar_lea.vmem %s358_s21, 4096  ;;  %p4157_p7 = scmp.lt.s32.totalorder %s358_s21, %s358_s21 }
  0x6e   : > { %p4150_p0 = scmp.ne.s32.totalorder %s358_s21, %s4149_s29  ;;  %p4158_p9 = scmp.lt.s32.totalorder %s4149_s29, %s4149_s29 }
  0x70   : > { %p4152_p2 = pnand %p4150_p0, %p4431_p8  ;;  %p4159_p4 = por %p4158_p9, %p4157_p7 }
  0x72   : > { %p4153_p5 = pneg %p4152_p2 }
  0x74   : > { %p4160_p10 = pnand %p4159_p4, %p4153_p5 }
  0x76   : > { %4163 = shalt.err (!%p4160_p10)
}
  0x77   : > { %3678 = dma.hbm_to_vmem [thread:$0]  (!%p4415_p6), %s5167_s7, 4096, %s358_s21, [#allocation9], %s4309_s26, %s4309_s26, %s4310_s13  }
  0x78   : > { %s4164_s8 = scalar_lea.hbm %s5169_s9, 8192 }
  0x79   : > { %p4165_p1 = scmp.ne.s32.totalorder %s5169_s9, %s4164_s8  ;;  %p4171_p12 = scmp.lt.u32.totalorder %s4164_s8, %s5169_s9 }
  0x7b   : > { %p4167_p3 = pnand %p4165_p1, %p4431_p8 }
  0x7d   : > { %p4168_p11 = pneg %p4167_p3 }
  0x7f   : > { %p4173_p13 = pnand %p4171_p12, %p4168_p11 }
  0x81   : > { %4176 = shalt.err (!%p4173_p13)
}
  0x82   : > { %s4177_s22 = scalar_lea.vmem %s374_s28, 8192  ;;  %p4185_p7 = scmp.lt.s32.totalorder %s374_s28, %s374_s28 }
  0x83   : > { %p4178_p0 = scmp.ne.s32.totalorder %s374_s28, %s4177_s22  ;;  %p4186_p9 = scmp.lt.s32.totalorder %s4177_s22, %s4177_s22 }
  0x85   : > { %p4180_p2 = pnand %p4178_p0, %p4431_p8  ;;  %p4187_p4 = por %p4186_p9, %p4185_p7 }
  0x87   : > { %p4181_p5 = pneg %p4180_p2 }
  0x89   : > { %p4188_p10 = pnand %p4187_p4, %p4181_p5 }
  0x8b   : > { %4191 = shalt.err (!%p4188_p10)
}
  0x8c   : > { %s5190_s26 = smov 8   ;;  %s5191_s13 = smov 128  }
  0x8d   : > { %3681 = dma.hbm_to_vmem [thread:$0]  (!%p4415_p6), %s5169_s9, 8192, %s374_s28, [#allocation12], %s5191_s13, %s5191_s13, %s5190_s26  }
  0x8e   : > { %s3173_s27 = sadd.s32 4294967294, %s4300_s20   ;;  %s4541_s16 = sadd.s32 1, %s4300_s20  }
  0x8f   : > { %s37_s29 = sadd.s32 1, %s4296_s19  ;;  %s34_s12 = ssub.s32 %s4300_s20, %s4541_s16 }
  0x90   : > { %p44_p8 = scmp.ne.s32.totalorder %s4296_s19, %s4292_s18  ;;  %p35_p1 = scmp.eq.s32.totalorder %s34_s12, 0 }
  0x91   : > { %p45_p3 = scmp.eq.s32.totalorder %s4300_s20, 0  ;;  %p50_p11 = scmp.ne.s32.totalorder %s4292_s18, %s4288_s17 }
  0x92   : > { %p284_p12 = scmp.eq.s32.totalorder %s4399_s23, 1  ;;  %p5192_p0 = scmp.eq.s32.totalorder %s4399_s23, 0 }
  0x93   : > { %s4553_s11 = scalar_select %p35_p1, %s4296_s19, %s37_s29  }
  0x94   : > { %p46_p13 = por %p45_p3, %p44_p8  ;;  %p4557_p2 = por %p5192_p0, %p50_p11 }
  0x95   : > { %p4561_p6 = por %p284_p12, %p44_p8  ;;  %p290_p5 = scmp.eq.s32.totalorder %s3173_s27, 1 }
  0x96   : > { %p3695_p7 = scmp.lt.s32.totalorder %s4300_s20, 2  ;;  %s390_s5 = sand.u32 1, %s4296_s19  }
  0x97   : > { %s5194_s28 = scalar_select %p4561_p6, 1, 0 }
  0x98   : > { %p4567_p9 = por %p290_p5, %p50_p11  ;;  %s3181_s30 = sshll.u32 %s390_s5, 6 }
  0x99   : > { %s3415_s14 = sshll.u32 %s4300_s20, 10  ;;  %s394_s26 = scalar_lea.vmem [#allocation2], %s3181_s30 }
  0x9a   : > { %s5195_s8 = scalar_select %p4567_p9, 1, 0 }
  0x9b   : > { %s4575_s22 = scalar_lea.hbm %s5160_s0, %s3415_s14  ;;  %s401_s13 = sshll.u32 %s394_s26, 4  ;;  %s4581_s13 = int_to_ptr.vmem [resolvable:$true] %s401_s13 }
  0x9c   : > { %p4577_p4 = pnand %p3695_p7, %p46_p13  ;;  %s4583_s10 = scalar_lea.sflag [#allocation3], %s390_s5 }
  0x9d   : > { %s4192_s27 = scalar_lea.hbm %s4575_s22, 1024  ;;  %s4197_s30 = scalar_lea.hbm %s5160_s0, 2048 }
  0x9e   : > { %p4193_p10 = scmp.ne.s32.totalorder %s4575_s22, %s4192_s27  ;;  %p4194_p8 = pneg %p4577_p4 }
  0x9f   : > { %p4198_p11 = scmp.lt.u32.totalorder %s4575_s22, %s5160_s0  ;;  %p4199_p12 = scmp.lt.u32.totalorder %s4197_s30, %s4192_s27 }
  0xa0   : > { %p4195_p1 = pnand %p4194_p8, %p4193_p10  ;;  %p4201_p0 = scmp.lt.u32.totalorder %s4192_s27, %s4575_s22 }
  0xa1   : > { %p4200_p13 = por %p4199_p12, %p4198_p11 }
  0xa2   : > { %p4196_p3 = pneg %p4195_p1 }
  0xa3   : > { %p4202_p5 = por %p4201_p0, %p4200_p13 }
  0xa5   : > { %p4203_p7 = pnand %p4202_p5, %p4196_p3 }
  0xa7   : > { %4206 = shalt.err (!%p4203_p7)
}
  0xa8   : > { %s4207_s5 = scalar_lea.vmem %s4581_s13, 1024  ;;  %s4313_s25 = smov [#allocation2]  }
  0xa9   : > { %p4208_p10 = scmp.ne.s32.totalorder %s4581_s13, %s4207_s5  ;;  %s4212_s26 = sshll.u32 %s4313_s25, 4  ;;  %s4213_s26 = int_to_ptr.vmem [resolvable:$false] %s4212_s26 }
  0xaa   : > { %s4214_s29 = scalar_lea.vmem %s4213_s26, 2048  ;;  %p4215_p6 = scmp.lt.s32.totalorder %s4581_s13, %s4213_s26 }
  0xab   : > { %p4210_p1 = pnand %p4208_p10, %p4194_p8  ;;  %p4216_p11 = scmp.lt.s32.totalorder %s4214_s29, %s4207_s5 }
  0xad   : > { %p4211_p9 = pneg %p4210_p1  ;;  %p4217_p12 = por %p4216_p11, %p4215_p6 }
  0xaf   : > { %p4218_p13 = pnand %p4217_p12, %p4211_p9 }
  0xb1   : > { %4221 = shalt.err (!%p4218_p13)
}
  0xb2   : > { %s5197_s27 = smov 4   ;;  %s5198_s12 = smov 64  }
  0xb3   : > { %3685 = dma.hbm_to_vmem [thread:$0]  (!%p4577_p4), %s4575_s22, 1024, %s4581_s13, %s4583_s10, %s5198_s12, %s5198_s12, %s5197_s27  }
  0xb4   : > { %p5199_p8 = scmp.ne.s32.totalorder %s5185_s24, 0 }
  0xb5   : > { %s4617_s30 = sand.u32 (!%p5199_p8), 1, %s4292_s18  }
  0xb6   : > { %413 = sbr.rel (%p5199_p8) target bundleno = 1420 (0x58c), region = 64  ;;  %s3185_s14 = sshll.u32 (!%p5199_p8), %s4617_s30, 6 }
  0xb7   : > { %s416_s15 = scalar_lea.sflag (!%p5199_p8), [#allocation3], %s4617_s30  ;;  %s4621_s5 = scalar_lea.vmem (!%p5199_p8), [#allocation2], %s3185_s14 }
  0xbd   : > { %4267 = dma.done.wait (%p4557_p2), %s416_s15, 1024  }
  0xbe   : > { %4269 = vsyncadd (%p4557_p2), %s416_s15, 4294966272  ;;  %p5200_p6 = scmp.eq.s32.totalorder %s4399_s23, 0 }
  0xc0   : > { %4271 = dma.done.wait (%p5200_p6), [#allocation6], 10240   ;;  %p5201_p9 = pmov %p5200_p6 }
  0xc1   : > { %p5202_p4 = pmov %p5200_p6 }
  0xc2   : > { %4273 = vsyncadd (%p5201_p9), [#allocation6], 4294957056 }
  0xc3   : > { %4275 = dma.done.wait (%p5202_p4), [#allocation9], 8192   ;;  %p5203_p3 = pmov %p5202_p4 }
  0xc5   : > { %4277 = vsyncadd (%p5203_p3), [#allocation9], 4294959104  ;;  %p5204_p0 = pmov %p5203_p3 }
  0xc7   : > { %4279 = dma.done.wait (%p5204_p0), [#allocation12], 8192   ;;  %p5205_p5 = pmov %p5204_p0 }
  0xc8   : > { %v4314_v0 = vmov 0   ;;  %v3748_v1 = vld [vmem:[#allocation5 + $0x4] ss:$8 sps:$4 sm:$0xff]   ;;  %v3750_v2 = vld [vmem:[#allocation5] ss:$8 sps:$4 sm:$0xff]   ;;  %v3774_v43 = vld [vmem:[%s4621_s5 + $0x10] sm:$0xff]  }
  0xc9   : > { %4281 = vsyncadd (%p5205_p5), [#allocation12], 4294959104  ;;  %685 = vmatprep.mubr.bf16.mxu0 %v4314_v0  ;;  %653 = vmatprep.subr.bf16.mxu0 %v3748_v1  ;;  %v3751_v3 = vld [vmem:[#allocation5 + $0x14] ss:$8 sps:$4 sm:$0xff]   ;;  %v3753_v4 = vld [vmem:[#allocation5 + $0x10] ss:$8 sps:$4 sm:$0xff]  }
  0xca   : > { %654 = vmatpush1.bf16.msra.mxu0 %v3750_v2  ;;  %v3754_v5 = vld [vmem:[#allocation5 + $0x24] ss:$8 sps:$4 sm:$0xff]   ;;  %v3756_v6 = vld [vmem:[#allocation5 + $0x20] ss:$8 sps:$4 sm:$0xff]   ;;  %v3757_v7 = vld [vmem:[#allocation5 + $0x34] ss:$8 sps:$4 sm:$0xff]  }
  0xcb   : > { %655 = vmatprep.subr.bf16.mxu0 %v3751_v3  ;;  %v3759_v8 = vld [vmem:[#allocation5 + $0x30] ss:$8 sps:$4 sm:$0xff]   ;;  %v3760_v9 = vld [vmem:[#allocation5 + $0x44] ss:$8 sps:$4 sm:$0xff]   ;;  %v3762_v10 = vld [vmem:[#allocation5 + $0x40] ss:$8 sps:$4 sm:$0xff]  }
  0xcc   : > { %v3763_v11 = vld [vmem:[#allocation5 + $0x54] ss:$8 sps:$4 sm:$0xff]   ;;  %v3765_v12 = vld [vmem:[#allocation5 + $0x50] ss:$8 sps:$4 sm:$0xff]   ;;  %v3766_v14 = vld [vmem:[#allocation5 + $0x64] ss:$8 sps:$4 sm:$0xff]  }
  0xcd   : > { %v3780_v13 = vld [vmem:[#allocation7 + $0x4] ss:$16 sps:$4 sm:$0xff]   ;;  %v3785_v15 = vld [vmem:[#allocation7] ss:$16 sps:$4 sm:$0xff]   ;;  %v3784_v23 = vld [vmem:[#allocation7 + $0xc] ss:$16 sps:$4 sm:$0xff]  }
  0xce   : > { %656 = vmatpush1.bf16.msra.mxu0 %v3753_v4  ;;  %1188 = vmatprep.subr.bf16.mxu1 %v3780_v13  ;;  %v3786_v16 = vld [vmem:[#allocation7 + $0x24] ss:$16 sps:$4 sm:$0xff]   ;;  %v3768_v17 = vld [vmem:[#allocation5 + $0x60] ss:$8 sps:$4 sm:$0xff]   ;;  %v3771_v21 = vld [vmem:[#allocation5 + $0x70] ss:$8 sps:$4 sm:$0xff]  }
  0xcf   : > { %657 = vmatprep.subr.bf16.mxu0 %v3754_v5  ;;  %v3769_v18 = vld [vmem:[#allocation5 + $0x74] ss:$8 sps:$4 sm:$0xff]   ;;  %1189 = vmatpush1.bf16.msra.mxu1 %v3785_v15  ;;  %v3791_v19 = vld [vmem:[#allocation7 + $0x20] ss:$16 sps:$4 sm:$0xff]   ;;  %v3782_v26 = vld [vmem:[#allocation7 + $0x8] ss:$16 sps:$4 sm:$0xff]  }
  0xd0   : > { %1190 = vmatprep.subr.bf16.mxu1 %v3786_v16  ;;  %v3792_v20 = vld [vmem:[#allocation7 + $0x44] ss:$16 sps:$4 sm:$0xff]   ;;  %v3797_v22 = vld [vmem:[#allocation7 + $0x40] ss:$16 sps:$4 sm:$0xff]   ;;  %v3790_v27 = vld [vmem:[#allocation7 + $0x2c] ss:$16 sps:$4 sm:$0xff]  }
  0xd1   : > { %v3798_v24 = vld [vmem:[#allocation7 + $0x64] ss:$16 sps:$4 sm:$0xff]   ;;  %v3803_v28 = vld [vmem:[#allocation7 + $0x60] ss:$16 sps:$4 sm:$0xff]   ;;  %v3788_v30 = vld [vmem:[#allocation7 + $0x28] ss:$16 sps:$4 sm:$0xff]  }
  0xd2   : > { %658 = vmatpush1.bf16.msra.mxu0 %v3756_v6  ;;  %v3772_v25 = vld [vmem:[%s4621_s5] sm:$0xff]   ;;  %v3796_v31 = vld [vmem:[#allocation7 + $0x4c] ss:$16 sps:$4 sm:$0xff]   ;;  %v3794_v35 = vld [vmem:[#allocation7 + $0x48] ss:$16 sps:$4 sm:$0xff]   ;;  %s5206_s29 = sld [smem:[#allocation21_spill]] }
  0xd3   : > { %659 = vmatprep.subr.bf16.mxu0 %v3757_v7  ;;  %1191 = vmatpush1.bf16.msra.mxu1 %v3791_v19  ;;  %v3804_v29 = vld [vmem:[#allocation7 + $0x84] ss:$16 sps:$4 sm:$0xff]   ;;  %v3809_v32 = vld [vmem:[#allocation7 + $0x80] ss:$16 sps:$4 sm:$0xff]   ;;  %v3773_v34 = vld [vmem:[%s4621_s5 + $0x8] sm:$0xff]   ;;  %s5207_s14 = sld [smem:[#allocation22_spill]] }
  0xd4   : > { %1192 = vmatprep.subr.bf16.mxu1 %v3792_v20  ;;  %v3810_v33 = vld [vmem:[#allocation7 + $0xa4] ss:$16 sps:$4 sm:$0xff]   ;;  %v3802_v36 = vld [vmem:[#allocation7 + $0x6c] ss:$16 sps:$4 sm:$0xff]   ;;  %v3815_v37 = vld [vmem:[#allocation7 + $0xa0] ss:$16 sps:$4 sm:$0xff]  }
  0xd5   : > { %v3816_v38 = vld [vmem:[#allocation7 + $0xc4] ss:$16 sps:$4 sm:$0xff]   ;;  %v3800_v39 = vld [vmem:[#allocation7 + $0x68] ss:$16 sps:$4 sm:$0xff]   ;;  %v3808_v40 = vld [vmem:[#allocation7 + $0x8c] ss:$16 sps:$4 sm:$0xff]  }
  0xd6   : > { %660 = vmatpush1.bf16.msra.mxu0 %v3759_v8  ;;  %v3821_v41 = vld [vmem:[#allocation7 + $0xc0] ss:$16 sps:$4 sm:$0xff]   ;;  %v3822_v42 = vld [vmem:[#allocation7 + $0xe4] ss:$16 sps:$4 sm:$0xff]   ;;  %v3806_v44 = vld [vmem:[#allocation7 + $0x88] ss:$16 sps:$4 sm:$0xff]  }
  0xd7   : > { %661 = vmatprep.subr.bf16.mxu0 %v3760_v9  ;;  %1193 = vmatpush1.bf16.msra.mxu1 %v3797_v22  ;;  %v3814_v45 = vld [vmem:[#allocation7 + $0xac] ss:$16 sps:$4 sm:$0xff]   ;;  %v3827_v46 = vld [vmem:[#allocation7 + $0xe0] ss:$16 sps:$4 sm:$0xff]   ;;  %v3828_v47 = vld [vmem:[#allocation7 + $0x104] ss:$16 sps:$4 sm:$0xff]  }
  0xd8   : > { %1194 = vmatprep.subr.bf16.mxu1 %v3798_v24  ;;  %v3812_v48 = vld [vmem:[#allocation7 + $0xa8] ss:$16 sps:$4 sm:$0xff]   ;;  %v3820_v49 = vld [vmem:[#allocation7 + $0xcc] ss:$16 sps:$4 sm:$0xff]   ;;  %v3833_v50 = vld [vmem:[#allocation7 + $0x100] ss:$16 sps:$4 sm:$0xff]  }
  0xd9   : > { %v3834_v51 = vld [vmem:[#allocation7 + $0x124] ss:$16 sps:$4 sm:$0xff]   ;;  %v3775_v52 = vld [vmem:[%s4621_s5 + $0x18] sm:$0xff]   ;;  %v3839_v55 = vld [vmem:[#allocation7 + $0x120] ss:$16 sps:$4 sm:$0xff]   ;;  %s3191_s15 = sshll.u32 %s4617_s30, 8 }
  0xda   : > { %662 = vmatpush1.bf16.msra.mxu0 %v3762_v10  ;;  %v3818_v53 = vld [vmem:[#allocation7 + $0xc8] ss:$16 sps:$4 sm:$0xff]   ;;  %v3826_v54 = vld [vmem:[#allocation7 + $0xec] ss:$16 sps:$4 sm:$0xff]   ;;  %v3840_v56 = vld [vmem:[#allocation7 + $0x144] ss:$16 sps:$4 sm:$0xff]  }
  0xdb   : > { %663 = vmatprep.subr.bf16.mxu0 %v3763_v11  ;;  %1195 = vmatpush1.bf16.msra.mxu1 %v3803_v28  ;;  %v3824_v57 = vld [vmem:[#allocation7 + $0xe8] ss:$16 sps:$4 sm:$0xff]   ;;  %v3832_v58 = vld [vmem:[#allocation7 + $0x10c] ss:$16 sps:$4 sm:$0xff]   ;;  %v3845_v59 = vld [vmem:[#allocation7 + $0x140] ss:$16 sps:$4 sm:$0xff]   ;;  %v515_v28 = vlaneseq }
  0xdc   : > { %1196 = vmatprep.subr.bf16.mxu1 %v3804_v29  ;;  %v3846_v60 = vld [vmem:[#allocation7 + $0x164] ss:$16 sps:$4 sm:$0xff]   ;;  %v3830_v62 = vld [vmem:[#allocation7 + $0x108] ss:$16 sps:$4 sm:$0xff]   ;;  %v3838_v63 = vld [vmem:[#allocation7 + $0x12c] ss:$16 sps:$4 sm:$0xff]  }
  0xdd   : > { %v3776_v61 = vld [vmem:[%s4621_s5 + $0x20] sm:$0xff]   ;;  %v3836_v3 = vld [vmem:[#allocation7 + $0x128] ss:$16 sps:$4 sm:$0xff]   ;;  %v3844_v4 = vld [vmem:[#allocation7 + $0x14c] ss:$16 sps:$4 sm:$0xff]   ;;  %v4655_v29 = vshrl.u32 %v515_v28, 7 }
  0xde   : > { %664 = vmatpush1.bf16.msra.mxu0 %v3765_v12  ;;  %v3851_v1 = vld [vmem:[#allocation7 + $0x160] ss:$16 sps:$4 sm:$0xff]   ;;  %v3852_v2 = vld [vmem:[#allocation7 + $0x184] ss:$16 sps:$4 sm:$0xff]   ;;  %v3777_v7 = vld [vmem:[%s4621_s5 + $0x28] sm:$0xff]   ;;  %s3417_s24 = sshll.u32 %s4399_s23, 12 }
  0xdf   : > { %665 = vmatprep.subr.bf16.mxu0 %v3766_v14  ;;  %1197 = vmatpush1.bf16.msra.mxu1 %v3809_v32  ;;  %v3857_v5 = vld [vmem:[#allocation7 + $0x180] ss:$16 sps:$4 sm:$0xff]   ;;  %v3858_v6 = vld [vmem:[#allocation7 + $0x1a4] ss:$16 sps:$4 sm:$0xff]   ;;  %v3842_v8 = vld [vmem:[#allocation7 + $0x148] ss:$16 sps:$4 sm:$0xff]  }
  0xe0   : > { %1198 = vmatprep.subr.bf16.mxu1 %v3810_v33  ;;  %v3850_v9 = vld [vmem:[#allocation7 + $0x16c] ss:$16 sps:$4 sm:$0xff]   ;;  %v3863_v10 = vld [vmem:[#allocation7 + $0x1a0] ss:$16 sps:$4 sm:$0xff]   ;;  %v3848_v11 = vld [vmem:[#allocation7 + $0x168] ss:$16 sps:$4 sm:$0xff]  }
  0xe1   : > { %v3856_v12 = vld [vmem:[#allocation7 + $0x18c] ss:$16 sps:$4 sm:$0xff]   ;;  %v3778_v13 = vld [vmem:[%s4621_s5 + $0x30] sm:$0xff]   ;;  %v3854_v14 = vld [vmem:[#allocation7 + $0x188] ss:$16 sps:$4 sm:$0xff]   ;;  %v4664_v32 = vsub.s32 1, %v4655_v29 }
  0xe2   : > { %666 = vmatpush1.bf16.msra.mxu0 %v3768_v17  ;;  %v3862_v15 = vld [vmem:[#allocation7 + $0x1ac] ss:$16 sps:$4 sm:$0xff]   ;;  %v3860_v16 = vld [vmem:[#allocation7 + $0x1a8] ss:$16 sps:$4 sm:$0xff]   ;;  %v3870_v22 = vld [vmem:[#allocation7 + $0x1e4] ss:$16 sps:$4 sm:$0xff]  }
  0xe3   : > { %667 = vmatprep.subr.bf16.mxu0 %v3769_v18  ;;  %1199 = vmatpush1.bf16.msra.mxu1 %v3815_v37  ;;  %v3779_v17 = vld [vmem:[%s4621_s5 + $0x38] sm:$0xff]   ;;  %v3864_v18 = vld [vmem:[#allocation7 + $0x1c4] ss:$16 sps:$4 sm:$0xff]   ;;  %s5047_s5 = scalar_lea.vmem [#allocation13], %s3191_s15  ;;  %s5208_s21 = sld [smem:[#allocation23_spill]] }
  0xe4   : > { %1200 = vmatprep.subr.bf16.mxu1 %v3816_v38  ;;  %v3868_v19 = vld [vmem:[#allocation7 + $0x1cc] ss:$16 sps:$4 sm:$0xff]   ;;  %v3866_v20 = vld [vmem:[#allocation7 + $0x1c8] ss:$16 sps:$4 sm:$0xff]   ;;  %s3052_s1 = sshll.u32 %s5047_s5, 4  ;;  %s3038_s23 = scalar_lea.sflag [#allocation4], %s4617_s30  ;;  %s5112_s1 = int_to_ptr.vmem [resolvable:$true] %s3052_s1 }
  0xe5   : > { %v3872_v24 = vld [vmem:[#allocation7 + $0x1e8] ss:$16 sps:$4 sm:$0xff]   ;;  %s4222_s25 = scalar_lea.vmem %s5112_s1, 4096  ;;  %p5209_p7 = scmp.ne.s32.totalorder %s5194_s28, 0 }
  0xe6   : > { %668 = vmatpush1.bf16.msra.mxu0 %v3771_v21  ;;  %v3869_v21 = vld [vmem:[#allocation7 + $0x1c0] ss:$16 sps:$4 sm:$0xff]   ;;  %p4223_p2 = scmp.ne.s32.totalorder %s5112_s1, %s4222_s25  ;;  %s4315_s26 = smov [#allocation13]  }
  0xe7   : > { %1301 = vmatprep.subr.bf16.mxu0 %v3784_v23  ;;  %1201 = vmatpush1.bf16.msra.mxu1 %v3821_v41  ;;  %v3874_v23 = vld [vmem:[#allocation7 + $0x1ec] ss:$16 sps:$4 sm:$0xff]  }
  0xe8   : > { %1202 = vmatprep.subr.bf16.mxu1 %v3822_v42  ;;  %p4224_p10 = pnand %p4223_p2, %p5209_p7 }
  0xe9   : > { %686 = vmatmul.mubr.bf16.vlgmr.msra.gmra.mrb[0].mxu0 %v3772_v25  ;;  %v3875_v25 = vld [vmem:[#allocation7 + $0x1e0] ss:$16 sps:$4 sm:$0xff]   ;;  %s5110_s10 = scalar_lea.hbm %s5208_s21, %s3417_s24 }
  0xea   : > { %695 = vmatprep.mubr.bf16.mxu0 %v4314_v0  ;;  %1302 = vmatpush1.bf16.msra.mxu0 %v3782_v26  ;;  %v3876_v26 = vld [vmem:[#allocation8 + $0x40] sm:$0xff]   ;;  %p4225_p1 = pneg %p4224_p10 }
  0xeb   : > { %1303 = vmatprep.subr.bf16.mxu0 %v3790_v27  ;;  %1203 = vmatpush1.bf16.msra.mxu1 %v3827_v46  ;;  %v3878_v27 = vld [vmem:[#allocation8 + $0xc0] sm:$0xff]  }
  0xec   : > { %1204 = vmatprep.subr.bf16.mxu1 %v3828_v47  ;;  %v3879_v46 = vld [vmem:[#allocation8 + $0x80] sm:$0xff]   ;;  %v3880_v47 = vld [vmem:[#allocation8 + $0x48] sm:$0xff]  }
  0xee   : > { %1304 = vmatpush1.bf16.msra.mxu0 %v3788_v30  ;;  %v4658_v30 = vsub.s32 0, %v4655_v29 }
  0xef   : > { %1305 = vmatprep.subr.bf16.mxu0 %v3796_v31  ;;  %1205 = vmatpush1.bf16.msra.mxu1 %v3833_v50  ;;  %v513_v31 = vld [vmem:[%s5162_s2] sm:$0x3] }
  0xf0   : > { %1206 = vmatprep.subr.bf16.mxu1 %v3834_v51  ;;  %v4667_v33 = vrot.slane %v513_v31, %v4658_v30 }
  0xf1   : > { %696 = vmatmul.mubr.bf16.gmra.mrb[4].mxu0 %v3773_v34 }
  0xf2   : > { %705 = vmatprep.mubr.bf16.mxu0 %v4314_v0  ;;  %1306 = vmatpush1.bf16.msra.mxu0 %v3794_v35  ;;  %v4670_v35 = vrot.slane %v513_v31, %v4664_v32 }
  0xf3   : > { %1307 = vmatprep.subr.bf16.mxu0 %v3802_v36  ;;  %1207 = vmatpush1.bf16.msra.mxu1 %v3839_v55 }
  0xf4   : > { %1208 = vmatprep.subr.bf16.mxu1 %v3840_v56 }
  0xf6   : > { %1308 = vmatpush1.bf16.msra.mxu0 %v3800_v39 }
  0xf7   : > { %1309 = vmatprep.subr.bf16.mxu0 %v3808_v40  ;;  %1209 = vmatpush1.bf16.msra.mxu1 %v3845_v59 }
  0xf8   : > { %1210 = vmatprep.subr.bf16.mxu1 %v3846_v60 }
  0xf9   : > { %706 = vmatmul.mubr.bf16.gmra.mrb[8].mxu0 %v3774_v43 }
  0xfa   : > { %715 = vmatprep.mubr.bf16.mxu0 %v4314_v0  ;;  %1310 = vmatpush1.bf16.msra.mxu0 %v3806_v44 }
  0xfb   : > { %1311 = vmatprep.subr.bf16.mxu0 %v3814_v45  ;;  %1211 = vmatpush1.bf16.msra.mxu1 %v3851_v1  ;;  %v3877_v45 = vld [vmem:[#allocation8] sm:$0xff]   ;;  %v3887_v1 = vld [vmem:[#allocation8 + $0x90] sm:$0xff]  }
  0xfc   : > { %1212 = vmatprep.subr.bf16.mxu1 %v3852_v2  ;;  %v3888_v2 = vld [vmem:[#allocation8 + $0x58] sm:$0xff]  }
  0xfe   : > { %1312 = vmatpush1.bf16.msra.mxu0 %v3812_v48  ;;  %v3882_v48 = vld [vmem:[#allocation8 + $0xc8] sm:$0xff]  }
  0xff   : > { %1313 = vmatprep.subr.bf16.mxu0 %v3820_v49  ;;  %1213 = vmatpush1.bf16.msra.mxu1 %v3857_v5 }
 0x100   : > { %1214 = vmatprep.subr.bf16.mxu1 %v3858_v6 }
 0x101   : > { %716 = vmatmul.mubr.bf16.gmra.mrb[12].mxu0 %v3775_v52  ;;  %v3881_v52 = vld [vmem:[#allocation8 + $0x8] sm:$0xff]  }
 0x102   : > { %725 = vmatprep.mubr.bf16.mxu0 %v4314_v0  ;;  %1314 = vmatpush1.bf16.msra.mxu0 %v3818_v53  ;;  %v3883_v53 = vld [vmem:[#allocation8 + $0x88] sm:$0xff]  }
 0x103   : > { %1315 = vmatprep.subr.bf16.mxu0 %v3826_v54  ;;  %1215 = vmatpush1.bf16.msra.mxu1 %v3863_v10 }
 0x104   : > { %1216 = vmatprep.subr.bf16.mxu1 %v3864_v18  ;;  %v3893_v18 = vld [vmem:[#allocation8 + $0x20] sm:$0xff]  }
 0x106   : > { %1316 = vmatpush1.bf16.msra.mxu0 %v3824_v57  ;;  %v3884_v57 = vld [vmem:[#allocation8 + $0x50] sm:$0xff]  }
 0x107   : > { %1317 = vmatprep.subr.bf16.mxu0 %v3832_v58  ;;  %1217 = vmatpush1.bf16.msra.mxu1 %v3869_v21  ;;  %v3886_v58 = vld [vmem:[#allocation8 + $0xd0] sm:$0xff]   ;;  %v3898_v21 = vld [vmem:[#allocation8 + $0xe8] sm:$0xff]  }
 0x108   : > { %1218 = vmatprep.subr.bf16.mxu1 %v3870_v22 }
 0x109   : > { %726 = vmatmul.mubr.bf16.gmra.mrb[16].mxu0 %v3776_v61 }
 0x10a   : > { %735 = vmatprep.mubr.bf16.mxu0 %v4314_v0  ;;  %1318 = vmatpush1.bf16.msra.mxu0 %v3830_v62 }
 0x10b   : > { %1319 = vmatprep.subr.bf16.mxu0 %v3838_v63  ;;  %1219 = vmatpush1.bf16.msra.mxu1 %v3875_v25  ;;  %v3885_v63 = vld [vmem:[#allocation8 + $0x10] sm:$0xff]   ;;  %v3897_v25 = vld [vmem:[#allocation8 + $0x28] sm:$0xff]  }
 0x10c   : > { %3418 = vmatprep.subr.bf16.mxu1 %v3876_v26  ;;  %v3899_v26 = vld [vmem:[#allocation8 + $0xa8] sm:$0xff]  }
 0x10e   : > { %1320 = vmatpush1.bf16.msra.mxu0 %v3836_v3  ;;  %v3890_v3 = vld [vmem:[#allocation8 + $0xd8] sm:$0xff]  }
 0x10f   : > { %1321 = vmatprep.subr.bf16.mxu0 %v3844_v4 }
 0x111   : > { %736 = vmatmul.mubr.bf16.gmra.mrb[20].mxu0 %v3777_v7  ;;  %v3889_v7 = vld [vmem:[#allocation8 + $0x18] sm:$0xff]  }
 0x112   : > { %745 = vmatprep.mubr.bf16.mxu0 %v4314_v0  ;;  %1322 = vmatpush1.bf16.msra.mxu0 %v3842_v8  ;;  %v3891_v8 = vld [vmem:[#allocation8 + $0x98] sm:$0xff]  }
 0x113   : > { %1323 = vmatprep.subr.bf16.mxu0 %v3850_v9 }
 0x116   : > { %1324 = vmatpush1.bf16.msra.mxu0 %v3848_v11 }
 0x117   : > { %1325 = vmatprep.subr.bf16.mxu0 %v3856_v12  ;;  %v3892_v12 = vld [vmem:[#allocation8 + $0x60] sm:$0xff]  }
 0x119   : > { %746 = vmatmul.mubr.bf16.gmra.mrb[24].mxu0 %v3778_v13  ;;  %v3894_v13 = vld [vmem:[#allocation8 + $0xe0] sm:$0xff]  }
 0x11a   : > { %755 = vmatprep.mubr.bf16.mxu0 %v4314_v0  ;;  %1326 = vmatpush1.bf16.msra.mxu0 %v3854_v14 }
 0x11b   : > { %1327 = vmatprep.subr.bf16.mxu0 %v3862_v15 }
 0x11e   : > { %1328 = vmatpush1.bf16.msra.mxu0 %v3860_v16 }
 0x11f   : > { %1329 = vmatprep.subr.bf16.mxu0 %v3868_v19  ;;  %v3895_v19 = vld [vmem:[#allocation8 + $0xa0] sm:$0xff]  }
 0x121   : > { %756 = vmatmul.mubr.bf16.gmra.mrb[28].mxu0 %v3779_v17 }
 0x122   : > { %1330 = vmatpush1.bf16.msra.mxu0 %v3866_v20  ;;  %v3896_v20 = vld [vmem:[#allocation8 + $0x68] sm:$0xff]  }
 0x123   : > { %1331 = vmatprep.subr.bf16.mxu0 %v3874_v23 }
 0x126   : > { %1332 = vmatpush1.bf16.msra.mxu0 %v3872_v24 }
 0x127   : > { %3482 = vmatprep.subr.bf16.mxu0 %v3878_v27 }
 0x1bc   : > { %v687_v34 = vpop.f32.mrb[0].mxu0 }
 0x1bd   : > { %v689_v36 = vpop.f32.mrb[1].mxu0  ;;  %v688_v38 = vadd.f32 %v687_v34, %v4667_v33  ;;  %v3900_v34 = vld [vmem:[#allocation8 + $0x70] sm:$0xff]  }
 0x1be   : > { %v691_v37 = vpop.f32.mrb[2].mxu0  ;;  %v690_v41 = vadd.f32 %v689_v36, %v4670_v35  ;;  %v3902_v36 = vld [vmem:[#allocation8 + $0xf0] sm:$0xff]  }
 0x1bf   : > { %v692_v39 = vadd.f32 %v691_v37, %v4667_v33  ;;  %v693_v40 = vpop.f32.mrb[3].mxu0 }
 0x1c0   : > { %v694_v42 = vadd.f32 %v693_v40, %v4670_v35 }
 0x1c1   : > { %v766_v43 = vpack.c.bf16 %v692_v39, %v688_v38 }
 0x1c2   : > { %v767_v44 = vpack.c.bf16 %v694_v42, %v690_v41  ;;  %v3901_v41 = vld [vmem:[#allocation8 + $0x30] sm:$0xff]  }
 0x1c3   : > { %v3903_v42 = vld [vmem:[#allocation8 + $0xb0] sm:$0xff]  }
 0x1c4   : > { %v697_v49 = vpop.f32.mrb[4].mxu0  ;;  %1220 = vmatprep.mubr.bf16.mxu1 %v767_v44  ;;  %1333 = vmatprep.mubr.bf16.mxu0 %v767_v44 }
 0x1c5   : > { %v699_v50 = vpop.f32.mrb[5].mxu0  ;;  %1221 = vmatmul.mubr.bf16.vlgmr.msra.gmra.mrb[0].mxu1 %v766_v43  ;;  %1334 = vmatmul.mubr.bf16.vlgmr.msra.gmra.mrb[32].mxu0 %v766_v43  ;;  %v698_v54 = vadd.f32 %v697_v49, %v4667_v33 }
 0x1c6   : > { %v701_v51 = vpop.f32.mrb[6].mxu0  ;;  %3419 = vmatpush3.bf16.msra.mxu1 %v3877_v45  ;;  %3483 = vmatpush3.bf16.msra.mxu0 %v3879_v46  ;;  %v700_v59 = vadd.f32 %v699_v50, %v4670_v35 }
 0x1c7   : > { %v702_v55 = vadd.f32 %v701_v51, %v4667_v33  ;;  %v703_v56 = vpop.f32.mrb[7].mxu0  ;;  %3420 = vmatprep.subr.bf16.mxu1 %v3880_v47  ;;  %3484 = vmatprep.subr.bf16.mxu0 %v3882_v48 }
 0x1c8   : > { %v704_v60 = vadd.f32 %v703_v56, %v4670_v35 }
 0x1c9   : > { %v768_v61 = vpack.c.bf16 %v702_v55, %v698_v54 }
 0x1ca   : > { %v769_v62 = vpack.c.bf16 %v704_v60, %v700_v59  ;;  %3421 = vmatpush3.bf16.msra.mxu1 %v3881_v52  ;;  %3485 = vmatpush3.bf16.msra.mxu0 %v3883_v53 }
 0x1cb   : > { %3422 = vmatprep.subr.bf16.mxu1 %v3884_v57  ;;  %3486 = vmatprep.subr.bf16.mxu0 %v3886_v58 }
 0x1cc   : > { %v707_v4 = vpop.f32.mrb[8].mxu0  ;;  %1230 = vmatprep.mubr.bf16.mxu1 %v769_v62  ;;  %1343 = vmatprep.mubr.bf16.mxu0 %v769_v62 }
 0x1cd   : > { %v709_v5 = vpop.f32.mrb[9].mxu0  ;;  %1231 = vmatmul.mubr.bf16.gmra.mrb[4].mxu1 %v768_v61  ;;  %1344 = vmatmul.mubr.bf16.gmra.mrb[36].mxu0 %v768_v61  ;;  %v708_v9 = vadd.f32 %v707_v4, %v4667_v33 }
 0x1ce   : > { %v711_v6 = vpop.f32.mrb[10].mxu0  ;;  %3423 = vmatpush3.bf16.msra.mxu1 %v3885_v63  ;;  %3487 = vmatpush3.bf16.msra.mxu0 %v3887_v1  ;;  %v710_v14 = vadd.f32 %v709_v5, %v4670_v35 }
 0x1cf   : > { %v712_v10 = vadd.f32 %v711_v6, %v4667_v33  ;;  %v713_v11 = vpop.f32.mrb[11].mxu0  ;;  %3424 = vmatprep.subr.bf16.mxu1 %v3888_v2  ;;  %3488 = vmatprep.subr.bf16.mxu0 %v3890_v3 }
 0x1d0   : > { %v714_v15 = vadd.f32 %v713_v11, %v4670_v35 }
 0x1d1   : > { %v770_v16 = vpack.c.bf16 %v712_v10, %v708_v9 }
 0x1d2   : > { %v771_v17 = vpack.c.bf16 %v714_v15, %v710_v14  ;;  %3425 = vmatpush3.bf16.msra.mxu1 %v3889_v7  ;;  %3489 = vmatpush3.bf16.msra.mxu0 %v3891_v8 }
 0x1d3   : > { %3426 = vmatprep.subr.bf16.mxu1 %v3892_v12  ;;  %3490 = vmatprep.subr.bf16.mxu0 %v3894_v13 }
 0x1d4   : > { %v717_v22 = vpop.f32.mrb[12].mxu0  ;;  %1240 = vmatprep.mubr.bf16.mxu1 %v771_v17  ;;  %1353 = vmatprep.mubr.bf16.mxu0 %v771_v17 }
 0x1d5   : > { %v719_v23 = vpop.f32.mrb[13].mxu0  ;;  %1241 = vmatmul.mubr.bf16.gmra.mrb[8].mxu1 %v770_v16  ;;  %1354 = vmatmul.mubr.bf16.gmra.mrb[40].mxu0 %v770_v16  ;;  %v718_v27 = vadd.f32 %v717_v22, %v4667_v33  ;;  %v3906_v22 = vld [vmem:[#allocation8 + $0xf8] sm:$0xff]  }
 0x1d6   : > { %v721_v24 = vpop.f32.mrb[14].mxu0  ;;  %3427 = vmatpush3.bf16.msra.mxu1 %v3893_v18  ;;  %3491 = vmatpush3.bf16.msra.mxu0 %v3895_v19  ;;  %v720_v37 = vadd.f32 %v719_v23, %v4670_v35  ;;  %v3907_v23 = vld [vmem:[#allocation8 + $0xb8] sm:$0xff]  }
 0x1d7   : > { %v722_v28 = vadd.f32 %v721_v24, %v4667_v33  ;;  %v723_v31 = vpop.f32.mrb[15].mxu0  ;;  %3428 = vmatprep.subr.bf16.mxu1 %v3896_v20  ;;  %3492 = vmatprep.subr.bf16.mxu0 %v3898_v21  ;;  %v3904_v20 = vld [vmem:[#allocation8 + $0x78] sm:$0xff]  }
 0x1d8   : > { %v724_v38 = vadd.f32 %v723_v31, %v4670_v35  ;;  %v3905_v21 = vld [vmem:[#allocation8 + $0x38] sm:$0xff]  }
 0x1d9   : > { %v772_v39 = vpack.c.bf16 %v722_v28, %v718_v27  ;;  %v3919_v24 = vld [vmem:[#allocation10 + $0xc] ss:$16 sps:$4 sm:$0xff]  }
 0x1da   : > { %v773_v40 = vpack.c.bf16 %v724_v38, %v720_v37  ;;  %3429 = vmatpush3.bf16.msra.mxu1 %v3897_v25  ;;  %3493 = vmatpush3.bf16.msra.mxu0 %v3899_v26  ;;  %v846_v25 = vld [vmem:[%s5164_s4] sm:$0xf]  ;;  %v862_v26 = vsub.s32 3, %v4655_v29 }
 0x1db   : > { %3430 = vmatprep.subr.bf16.mxu1 %v3900_v34  ;;  %3494 = vmatprep.subr.bf16.mxu0 %v3902_v36  ;;  %v4710_v27 = vrot.slane %v846_v25, %v4658_v30  ;;  %v4717_v36 = vrot.slane %v846_v25, %v4664_v32 }
 0x1dc   : > { %v727_v43 = vpop.f32.mrb[16].mxu0  ;;  %1250 = vmatprep.mubr.bf16.mxu1 %v773_v40  ;;  %1363 = vmatprep.mubr.bf16.mxu0 %v773_v40  ;;  %v4721_v37 = vrot.slane %v846_v25, %v862_v26 }
 0x1dd   : > { %v729_v44 = vpop.f32.mrb[17].mxu0  ;;  %1251 = vmatmul.mubr.bf16.gmra.mrb[12].mxu1 %v772_v39  ;;  %1364 = vmatmul.mubr.bf16.gmra.mrb[44].mxu0 %v772_v39  ;;  %v728_v46 = vadd.f32 %v727_v43, %v4667_v33 }
 0x1de   : > { %v731_v45 = vpop.f32.mrb[18].mxu0  ;;  %3431 = vmatpush3.bf16.msra.mxu1 %v3901_v41  ;;  %3495 = vmatpush3.bf16.msra.mxu0 %v3903_v42  ;;  %v730_v49 = vadd.f32 %v729_v44, %v4670_v35 }
 0x1df   : > { %v732_v47 = vadd.f32 %v731_v45, %v4667_v33  ;;  %v733_v48 = vpop.f32.mrb[19].mxu0  ;;  %3432 = vmatprep.subr.bf16.mxu1 %v3904_v20  ;;  %3496 = vmatprep.subr.bf16.mxu0 %v3906_v22  ;;  %v3929_v22 = vld [vmem:[#allocation10 + $0x48] ss:$16 sps:$4 sm:$0xff]  }
 0x1e0   : > { %v734_v50 = vadd.f32 %v733_v48, %v4670_v35 }
 0x1e1   : > { %v774_v51 = vpack.c.bf16 %v732_v47, %v728_v46 }
 0x1e2   : > { %v775_v52 = vpack.c.bf16 %v734_v50, %v730_v49  ;;  %3433 = vmatpush3.bf16.msra.mxu1 %v3905_v21  ;;  %3497 = vmatpush3.bf16.msra.mxu0 %v3907_v23  ;;  %v3914_v21 = vld [vmem:[#allocation10 + $0x40] ss:$16 sps:$4 sm:$0xff]   ;;  %v3922_v23 = vld [vmem:[#allocation10 + $0x64] ss:$16 sps:$4 sm:$0xff]  }
 0x1e3   : > { %2238 = vmatprep.subr.bf16.mxu0 %v3919_v24 }
 0x1e4   : > { %v737_v53 = vpop.f32.mrb[20].mxu0  ;;  %1260 = vmatprep.mubr.bf16.mxu1 %v775_v52  ;;  %1373 = vmatprep.mubr.bf16.mxu0 %v775_v52 }
 0x1e5   : > { %v739_v54 = vpop.f32.mrb[21].mxu0  ;;  %1261 = vmatmul.mubr.bf16.gmra.mrb[16].mxu1 %v774_v51  ;;  %1374 = vmatmul.mubr.bf16.gmra.mrb[48].mxu0 %v774_v51  ;;  %v738_v56 = vadd.f32 %v737_v53, %v4667_v33 }
 0x1e6   : > { %v741_v55 = vpop.f32.mrb[22].mxu0  ;;  %v740_v59 = vadd.f32 %v739_v54, %v4670_v35 }
 0x1e7   : > { %v742_v57 = vadd.f32 %v741_v55, %v4667_v33  ;;  %v743_v58 = vpop.f32.mrb[23].mxu0 }
 0x1e8   : > { %v744_v60 = vadd.f32 %v743_v58, %v4670_v35  ;;  %v3913_v58 = vld [vmem:[#allocation10 + $0x24] ss:$16 sps:$4 sm:$0xff]  }
 0x1e9   : > { %v776_v61 = vpack.c.bf16 %v742_v57, %v738_v56  ;;  %v3908_v56 = vld [vmem:[#allocation10] ss:$16 sps:$4 sm:$0xff]   ;;  %v3917_v57 = vld [vmem:[#allocation10 + $0x8] ss:$16 sps:$4 sm:$0xff]  }
 0x1ea   : > { %v777_v62 = vpack.c.bf16 %v744_v60, %v740_v59  ;;  %v3925_v59 = vld [vmem:[#allocation10 + $0x2c] ss:$16 sps:$4 sm:$0xff]  }
 0x1ec   : > { %v747_v63 = vpop.f32.mrb[24].mxu0  ;;  %1270 = vmatprep.mubr.bf16.mxu1 %v777_v62  ;;  %1383 = vmatprep.mubr.bf16.mxu0 %v777_v62 }
 0x1ed   : > { %v749_v1 = vpop.f32.mrb[25].mxu0  ;;  %1271 = vmatmul.mubr.bf16.gmra.mrb[20].mxu1 %v776_v61  ;;  %1384 = vmatmul.mubr.bf16.gmra.mrb[52].mxu0 %v776_v61  ;;  %v748_v3 = vadd.f32 %v747_v63, %v4667_v33 }
 0x1ee   : > { %v751_v2 = vpop.f32.mrb[26].mxu0  ;;  %v750_v6 = vadd.f32 %v749_v1, %v4670_v35 }
 0x1ef   : > { %v752_v4 = vadd.f32 %v751_v2, %v4667_v33  ;;  %v753_v5 = vpop.f32.mrb[27].mxu0 }
 0x1f0   : > { %v754_v7 = vadd.f32 %v753_v5, %v4670_v35  ;;  %v3923_v5 = vld [vmem:[#allocation10 + $0x28] ss:$16 sps:$4 sm:$0xff]  }
 0x1f1   : > { %v778_v8 = vpack.c.bf16 %v752_v4, %v748_v3  ;;  %v3911_v4 = vld [vmem:[#allocation10 + $0x20] ss:$16 sps:$4 sm:$0xff]  }
 0x1f2   : > { %v779_v9 = vpack.c.bf16 %v754_v7, %v750_v6 }
 0x1f4   : > { %v757_v10 = vpop.f32.mrb[28].mxu0  ;;  %1280 = vmatprep.mubr.bf16.mxu1 %v779_v9  ;;  %1393 = vmatprep.mubr.bf16.mxu0 %v779_v9 }
 0x1f5   : > { %v759_v11 = vpop.f32.mrb[29].mxu0  ;;  %1281 = vmatmul.mubr.bf16.gmra.mrb[24].mxu1 %v778_v8  ;;  %1394 = vmatmul.mubr.bf16.gmra.mrb[56].mxu0 %v778_v8  ;;  %v758_v13 = vadd.f32 %v757_v10, %v4667_v33 }
 0x1f6   : > { %v761_v12 = vpop.f32.mrb[30].mxu0  ;;  %v760_v16 = vadd.f32 %v759_v11, %v4670_v35  ;;  %v3916_v11 = vld [vmem:[#allocation10 + $0x44] ss:$16 sps:$4 sm:$0xff]  }
 0x1f7   : > { %v762_v14 = vadd.f32 %v761_v12, %v4667_v33  ;;  %v763_v15 = vpop.f32.mrb[31].mxu0  ;;  %v3910_v33 = vld [vmem:[#allocation10 + $0x4] ss:$16 sps:$4 sm:$0xff]   ;;  %v3931_v12 = vld [vmem:[#allocation10 + $0x4c] ss:$16 sps:$4 sm:$0xff]  }
 0x1f8   : > { %v764_v17 = vadd.f32 %v763_v15, %v4670_v35  ;;  %2125 = vmatprep.subr.bf16.mxu1 %v3910_v33  ;;  %v858_v35 = vsub.s32 2, %v4655_v29  ;;  %v3937_v33 = vld [vmem:[#allocation10 + $0x6c] ss:$16 sps:$4 sm:$0xff]  }
 0x1f9   : > { %v780_v18 = vpack.c.bf16 %v762_v14, %v758_v13 }
 0x1fa   : > { %v781_v19 = vpack.c.bf16 %v764_v17, %v760_v16  ;;  %v4714_v28 = vrot.slane %v846_v25, %v858_v35 }
 0x1fc   : > { %1290 = vmatprep.mubr.bf16.mxu1 %v781_v19  ;;  %1403 = vmatprep.mubr.bf16.mxu0 %v781_v19 }
 0x1fd   : > { %1291 = vmatmul.mubr.bf16.gmra.mrb[28].mxu1 %v780_v18  ;;  %1404 = vmatmul.mubr.bf16.gmra.mrb[60].mxu0 %v780_v18 }
 0x298   : > { %v1222_v31 = vpop.f32.mrb[0].mxu1  ;;  %v1335_v34 = vpop.f32.mrb[32].mxu0 }
 0x299   : > { %v1224_v38 = vpop.f32.mrb[1].mxu1  ;;  %v1337_v39 = vpop.f32.mrb[33].mxu0  ;;  %v1223_v42 = vadd.f32 %v1222_v31, %v4710_v27  ;;  %v1336_v43 = vadd.f32 %v1335_v34, %v4714_v28 }
 0x29a   : > { %v1226_v40 = vpop.f32.mrb[2].mxu1  ;;  %v1339_v41 = vpop.f32.mrb[34].mxu0  ;;  %v1225_v48 = vadd.f32 %v1224_v38, %v4717_v36  ;;  %v1338_v49 = vadd.f32 %v1337_v39, %v4721_v37 }
 0x29b   : > { %v1227_v44 = vadd.f32 %v1226_v40, %v4710_v27  ;;  %v1340_v45 = vadd.f32 %v1339_v41, %v4714_v28  ;;  %v1228_v46 = vpop.f32.mrb[3].mxu1  ;;  %v1341_v47 = vpop.f32.mrb[35].mxu0  ;;  %v3920_v41 = vld [vmem:[#allocation10 + $0x60] ss:$16 sps:$4 sm:$0xff]  }
 0x29c   : > { %v1229_v50 = vadd.f32 %v1228_v46, %v4717_v36  ;;  %v1342_v51 = vadd.f32 %v1341_v47, %v4721_v37 }
 0x29d   : > { %v1414_v52 = vpack.c.bf16 %v1227_v44, %v1223_v42  ;;  %v1416_v53 = vpack.c.bf16 %v1340_v45, %v1336_v43  ;;  %v3935_v42 = vld [vmem:[#allocation10 + $0x68] ss:$16 sps:$4 sm:$0xff]  }
 0x29e   : > { %v1415_v54 = vpack.c.bf16 %v1229_v50, %v1225_v48  ;;  %v1417_v55 = vpack.c.bf16 %v1342_v51, %v1338_v49  ;;  %v3928_v48 = vld [vmem:[#allocation10 + $0x84] ss:$16 sps:$4 sm:$0xff]   ;;  %v3943_v49 = vld [vmem:[#allocation10 + $0x8c] ss:$16 sps:$4 sm:$0xff]  }
 0x2a0   : > { %v1232_v60 = vpop.f32.mrb[4].mxu1  ;;  %v1345_v61 = vpop.f32.mrb[36].mxu0  ;;  %1741 = vmatprep.mubr.bf16.mxu1 %v1415_v54  ;;  %1838 = vmatprep.mubr.bf16.mxu0 %v1417_v55 }
 0x2a1   : > { %v1234_v62 = vpop.f32.mrb[5].mxu1  ;;  %v1347_v63 = vpop.f32.mrb[37].mxu0  ;;  %1742 = vmatmul.mubr.bf16.vlgmr.msra.gmra.mrb[32].mxu1 %v1414_v52  ;;  %1839 = vmatmul.mubr.bf16.vlgmr.msra.gmra.mrb[64].mxu0 %v1416_v53  ;;  %v1233_v1 = vadd.f32 %v1232_v60, %v4710_v27  ;;  %v1346_v6 = vadd.f32 %v1345_v61, %v4714_v28  ;;  %v3934_v60 = vld [vmem:[#allocation10 + $0xa4] ss:$16 sps:$4 sm:$0xff]  }
 0x2a2   : > { %v1236_v2 = vpop.f32.mrb[6].mxu1  ;;  %v1349_v3 = vpop.f32.mrb[38].mxu0  ;;  %2126 = vmatpush1.bf16.msra.mxu1 %v3908_v56  ;;  %2239 = vmatpush1.bf16.msra.mxu0 %v3917_v57  ;;  %v1235_v13 = vadd.f32 %v1234_v62, %v4717_v36  ;;  %v1348_v14 = vadd.f32 %v1347_v63, %v4721_v37 }
 0x2a3   : > { %v1237_v7 = vadd.f32 %v1236_v2, %v4710_v27  ;;  %v1350_v8 = vadd.f32 %v1349_v3, %v4714_v28  ;;  %v1238_v9 = vpop.f32.mrb[7].mxu1  ;;  %v1351_v10 = vpop.f32.mrb[39].mxu0  ;;  %2127 = vmatprep.subr.bf16.mxu1 %v3913_v58  ;;  %2240 = vmatprep.subr.bf16.mxu0 %v3925_v59  ;;  %v3926_v58 = vld [vmem:[#allocation10 + $0x80] ss:$16 sps:$4 sm:$0xff]   ;;  %v3941_v59 = vld [vmem:[#allocation10 + $0x88] ss:$16 sps:$4 sm:$0xff]  }
 0x2a4   : > { %v1239_v15 = vadd.f32 %v1238_v9, %v4717_v36  ;;  %v1352_v16 = vadd.f32 %v1351_v10, %v4721_v37 }
 0x2a5   : > { %v1418_v17 = vpack.c.bf16 %v1237_v7, %v1233_v1  ;;  %v1420_v18 = vpack.c.bf16 %v1350_v8, %v1346_v6 }
 0x2a6   : > { %v1419_v19 = vpack.c.bf16 %v1239_v15, %v1235_v13  ;;  %v1421_v20 = vpack.c.bf16 %v1352_v16, %v1348_v14  ;;  %2128 = vmatpush1.bf16.msra.mxu1 %v3911_v4  ;;  %2241 = vmatpush1.bf16.msra.mxu0 %v3923_v5  ;;  %v3932_v4 = vld [vmem:[#allocation10 + $0xa0] ss:$16 sps:$4 sm:$0xff]  }
 0x2a7   : > { %2129 = vmatprep.subr.bf16.mxu1 %v3916_v11  ;;  %2242 = vmatprep.subr.bf16.mxu0 %v3931_v12  ;;  %v3940_v11 = vld [vmem:[#allocation10 + $0xc4] ss:$16 sps:$4 sm:$0xff]  }
 0x2a8   : > { %v1242_v24 = vpop.f32.mrb[8].mxu1  ;;  %v1355_v25 = vpop.f32.mrb[40].mxu0  ;;  %1749 = vmatprep.mubr.bf16.mxu1 %v1419_v19  ;;  %1846 = vmatprep.mubr.bf16.mxu0 %v1421_v20  ;;  %v3938_v20 = vld [vmem:[#allocation10 + $0xc0] ss:$16 sps:$4 sm:$0xff]  }
 0x2a9   : > { %v1244_v31 = vpop.f32.mrb[9].mxu1  ;;  %v1357_v34 = vpop.f32.mrb[41].mxu0  ;;  %1750 = vmatmul.mubr.bf16.gmra.mrb[36].mxu1 %v1418_v17  ;;  %1847 = vmatmul.mubr.bf16.gmra.mrb[68].mxu0 %v1420_v18  ;;  %v1243_v38 = vadd.f32 %v1242_v24, %v4710_v27  ;;  %v1356_v43 = vadd.f32 %v1355_v25, %v4714_v28 }
 0x2aa   : > { %v1246_v39 = vpop.f32.mrb[10].mxu1  ;;  %v1359_v40 = vpop.f32.mrb[42].mxu0  ;;  %2130 = vmatpush1.bf16.msra.mxu1 %v3914_v21  ;;  %2243 = vmatpush1.bf16.msra.mxu0 %v3929_v22  ;;  %v1245_v50 = vadd.f32 %v1244_v31, %v4717_v36  ;;  %v1358_v51 = vadd.f32 %v1357_v34, %v4721_v37 }
 0x2ab   : > { %v1247_v44 = vadd.f32 %v1246_v39, %v4710_v27  ;;  %v1360_v45 = vadd.f32 %v1359_v40, %v4714_v28  ;;  %v1248_v46 = vpop.f32.mrb[11].mxu1  ;;  %v1361_v47 = vpop.f32.mrb[43].mxu0  ;;  %2131 = vmatprep.subr.bf16.mxu1 %v3922_v23  ;;  %2244 = vmatprep.subr.bf16.mxu0 %v3937_v33 }
 0x2ac   : > { %v1249_v52 = vadd.f32 %v1248_v46, %v4717_v36  ;;  %v1362_v53 = vadd.f32 %v1361_v47, %v4721_v37 }
 0x2ad   : > { %v1422_v54 = vpack.c.bf16 %v1247_v44, %v1243_v38  ;;  %v1424_v55 = vpack.c.bf16 %v1360_v45, %v1356_v43 }
 0x2ae   : > { %v1423_v56 = vpack.c.bf16 %v1249_v52, %v1245_v50  ;;  %v1425_v57 = vpack.c.bf16 %v1362_v53, %v1358_v51  ;;  %2132 = vmatpush1.bf16.msra.mxu1 %v3920_v41  ;;  %2245 = vmatpush1.bf16.msra.mxu0 %v3935_v42 }
 0x2af   : > { %2133 = vmatprep.subr.bf16.mxu1 %v3928_v48  ;;  %2246 = vmatprep.subr.bf16.mxu0 %v3943_v49 }
 0x2b0   : > { %v1252_v61 = vpop.f32.mrb[12].mxu1  ;;  %v1365_v62 = vpop.f32.mrb[44].mxu0  ;;  %1757 = vmatprep.mubr.bf16.mxu1 %v1423_v56  ;;  %1854 = vmatprep.mubr.bf16.mxu0 %v1425_v57 }
 0x2b1   : > { %v1254_v63 = vpop.f32.mrb[13].mxu1  ;;  %v1367_v1 = vpop.f32.mrb[45].mxu0  ;;  %1758 = vmatmul.mubr.bf16.gmra.mrb[40].mxu1 %v1422_v54  ;;  %1855 = vmatmul.mubr.bf16.gmra.mrb[72].mxu0 %v1424_v55  ;;  %v1253_v5 = vadd.f32 %v1252_v61, %v4710_v27  ;;  %v1366_v6 = vadd.f32 %v1365_v62, %v4714_v28 }
 0x2b2   : > { %v1256_v2 = vpop.f32.mrb[14].mxu1  ;;  %v1369_v3 = vpop.f32.mrb[46].mxu0  ;;  %2134 = vmatpush1.bf16.msra.mxu1 %v3926_v58  ;;  %2247 = vmatpush1.bf16.msra.mxu0 %v3941_v59  ;;  %v1255_v12 = vadd.f32 %v1254_v63, %v4717_v36  ;;  %v1368_v13 = vadd.f32 %v1367_v1, %v4721_v37 }
 0x2b3   : > { %v1257_v7 = vadd.f32 %v1256_v2, %v4710_v27  ;;  %v1370_v8 = vadd.f32 %v1369_v3, %v4714_v28  ;;  %v1258_v9 = vpop.f32.mrb[15].mxu1  ;;  %v1371_v10 = vpop.f32.mrb[47].mxu0  ;;  %2135 = vmatprep.subr.bf16.mxu1 %v3934_v60 }
 0x2b4   : > { %v1259_v14 = vadd.f32 %v1258_v9, %v4717_v36  ;;  %v1372_v15 = vadd.f32 %v1371_v10, %v4721_v37 }
 0x2b5   : > { %v1426_v16 = vpack.c.bf16 %v1257_v7, %v1253_v5  ;;  %v1428_v17 = vpack.c.bf16 %v1370_v8, %v1366_v6 }
 0x2b6   : > { %v1427_v18 = vpack.c.bf16 %v1259_v14, %v1255_v12  ;;  %v1429_v19 = vpack.c.bf16 %v1372_v15, %v1368_v13  ;;  %2136 = vmatpush1.bf16.msra.mxu1 %v3932_v4 }
 0x2b7   : > { %2137 = vmatprep.subr.bf16.mxu1 %v3940_v11 }
 0x2b8   : > { %v1262_v21 = vpop.f32.mrb[16].mxu1  ;;  %v1375_v22 = vpop.f32.mrb[48].mxu0  ;;  %1765 = vmatprep.mubr.bf16.mxu1 %v1427_v18  ;;  %1862 = vmatprep.mubr.bf16.mxu0 %v1429_v19 }
 0x2b9   : > { %v1264_v23 = vpop.f32.mrb[17].mxu1  ;;  %v1377_v33 = vpop.f32.mrb[49].mxu0  ;;  %1766 = vmatmul.mubr.bf16.gmra.mrb[44].mxu1 %v1426_v16  ;;  %1863 = vmatmul.mubr.bf16.gmra.mrb[76].mxu0 %v1428_v17  ;;  %v1263_v31 = vadd.f32 %v1262_v21, %v4710_v27  ;;  %v1376_v34 = vadd.f32 %v1375_v22, %v4714_v28 }
 0x2ba   : > { %v1266_v24 = vpop.f32.mrb[18].mxu1  ;;  %v1379_v25 = vpop.f32.mrb[50].mxu0  ;;  %2138 = vmatpush1.bf16.msra.mxu1 %v3938_v20  ;;  %v1265_v42 = vadd.f32 %v1264_v23, %v4717_v36  ;;  %v1378_v43 = vadd.f32 %v1377_v33, %v4721_v37 }
 0x2bb   : > { %v1267_v38 = vadd.f32 %v1266_v24, %v4710_v27  ;;  %v1380_v39 = vadd.f32 %v1379_v25, %v4714_v28  ;;  %v1268_v40 = vpop.f32.mrb[19].mxu1  ;;  %v1381_v41 = vpop.f32.mrb[51].mxu0 }
 0x2bc   : > { %v1269_v44 = vadd.f32 %v1268_v40, %v4717_v36  ;;  %v1382_v45 = vadd.f32 %v1381_v41, %v4721_v37 }
 0x2bd   : > { %v1430_v46 = vpack.c.bf16 %v1267_v38, %v1263_v31  ;;  %v1432_v47 = vpack.c.bf16 %v1380_v39, %v1376_v34 }
 0x2be   : > { %v1431_v48 = vpack.c.bf16 %v1269_v44, %v1265_v42  ;;  %v1433_v49 = vpack.c.bf16 %v1382_v45, %v1378_v43 }
 0x2c0   : > { %v1272_v50 = vpop.f32.mrb[20].mxu1  ;;  %v1385_v51 = vpop.f32.mrb[52].mxu0  ;;  %1773 = vmatprep.mubr.bf16.mxu1 %v1431_v48  ;;  %1870 = vmatprep.mubr.bf16.mxu0 %v1433_v49 }
 0x2c1   : > { %v1274_v52 = vpop.f32.mrb[21].mxu1  ;;  %v1387_v53 = vpop.f32.mrb[53].mxu0  ;;  %1774 = vmatmul.mubr.bf16.gmra.mrb[48].mxu1 %v1430_v46  ;;  %1871 = vmatmul.mubr.bf16.gmra.mrb[80].mxu0 %v1432_v47  ;;  %v1273_v56 = vadd.f32 %v1272_v50, %v4710_v27  ;;  %v1386_v57 = vadd.f32 %v1385_v51, %v4714_v28 }
 0x2c2   : > { %v1276_v54 = vpop.f32.mrb[22].mxu1  ;;  %v1389_v55 = vpop.f32.mrb[54].mxu0  ;;  %v1275_v62 = vadd.f32 %v1274_v52, %v4717_v36  ;;  %v1388_v63 = vadd.f32 %v1387_v53, %v4721_v37 }
 0x2c3   : > { %v1277_v58 = vadd.f32 %v1276_v54, %v4710_v27  ;;  %v1390_v59 = vadd.f32 %v1389_v55, %v4714_v28  ;;  %v1278_v60 = vpop.f32.mrb[23].mxu1  ;;  %v1391_v61 = vpop.f32.mrb[55].mxu0 }
 0x2c4   : > { %v1279_v1 = vadd.f32 %v1278_v60, %v4717_v36  ;;  %v1392_v2 = vadd.f32 %v1391_v61, %v4721_v37  ;;  %v3958_v60 = vld [vmem:[#allocation11 + $0x4] ss:$8 sps:$4 sm:$0xff]  }
 0x2c5   : > { %v1434_v3 = vpack.c.bf16 %v1277_v58, %v1273_v56  ;;  %v1436_v4 = vpack.c.bf16 %v1390_v59, %v1386_v57  ;;  %v3952_v56 = vld [vmem:[#allocation10 + $0xcc] ss:$16 sps:$4 sm:$0xff]   ;;  %v3947_v58 = vld [vmem:[#allocation10 + $0xe0] ss:$16 sps:$4 sm:$0xff]   ;;  %v3953_v59 = vld [vmem:[#allocation10 + $0xe8] ss:$16 sps:$4 sm:$0xff]  }
 0x2c6   : > { %v1435_v5 = vpack.c.bf16 %v1279_v1, %v1275_v62  ;;  %v1437_v6 = vpack.c.bf16 %v1392_v2, %v1388_v63  ;;  %v3955_v57 = vld [vmem:[#allocation10 + $0xec] ss:$16 sps:$4 sm:$0xff]   ;;  %v4795_v1 = vld [vmem:[%s5166_s6] ss:$0 sm:$0xff] }
 0x2c7   : > { %v4789_v61 = vld [vmem:[#allocation11 + $0x104] ss:$8 sps:$4 sm:$0xff]  }
 0x2c8   : > { %v1282_v7 = vpop.f32.mrb[24].mxu1  ;;  %v1395_v8 = vpop.f32.mrb[56].mxu0  ;;  %1781 = vmatprep.mubr.bf16.mxu1 %v1435_v5  ;;  %1878 = vmatprep.mubr.bf16.mxu0 %v1437_v6 }
 0x2c9   : > { %v1284_v9 = vpop.f32.mrb[25].mxu1  ;;  %v1397_v10 = vpop.f32.mrb[57].mxu0  ;;  %1782 = vmatmul.mubr.bf16.gmra.mrb[52].mxu1 %v1434_v3  ;;  %1879 = vmatmul.mubr.bf16.gmra.mrb[84].mxu0 %v1436_v4  ;;  %v1283_v13 = vadd.f32 %v1282_v7, %v4710_v27  ;;  %v1396_v14 = vadd.f32 %v1395_v8, %v4714_v28 }
 0x2ca   : > { %v1286_v11 = vpop.f32.mrb[26].mxu1  ;;  %v1399_v12 = vpop.f32.mrb[58].mxu0  ;;  %v1285_v19 = vadd.f32 %v1284_v9, %v4717_v36  ;;  %v1398_v20 = vadd.f32 %v1397_v10, %v4721_v37 }
 0x2cb   : > { %v1287_v15 = vadd.f32 %v1286_v11, %v4710_v27  ;;  %v1400_v16 = vadd.f32 %v1399_v12, %v4714_v28  ;;  %v1288_v17 = vpop.f32.mrb[27].mxu1  ;;  %v1401_v18 = vpop.f32.mrb[59].mxu0 }
 0x2cc   : > { %v1289_v21 = vadd.f32 %v1288_v17, %v4717_v36  ;;  %v1402_v22 = vadd.f32 %v1401_v18, %v4721_v37 }
 0x2cd   : > { %v1438_v23 = vpack.c.bf16 %v1287_v15, %v1283_v13  ;;  %v1440_v33 = vpack.c.bf16 %v1400_v16, %v1396_v14 }
 0x2ce   : > { %v1439_v24 = vpack.c.bf16 %v1289_v21, %v1285_v19  ;;  %v1441_v25 = vpack.c.bf16 %v1402_v22, %v1398_v20 }
 0x2d0   : > { %v1292_v31 = vpop.f32.mrb[28].mxu1  ;;  %v1405_v34 = vpop.f32.mrb[60].mxu0  ;;  %1789 = vmatprep.mubr.bf16.mxu1 %v1439_v24  ;;  %1886 = vmatprep.mubr.bf16.mxu0 %v1441_v25  ;;  %v3956_v24 = vld [vmem:[#allocation11] ss:$8 sps:$4 sm:$0xff]  }
 0x2d1   : > { %v1294_v38 = vpop.f32.mrb[29].mxu1  ;;  %v1407_v39 = vpop.f32.mrb[61].mxu0  ;;  %1790 = vmatmul.mubr.bf16.gmra.mrb[56].mxu1 %v1438_v23  ;;  %1887 = vmatmul.mubr.bf16.gmra.mrb[88].mxu0 %v1440_v33  ;;  %v1293_v42 = vadd.f32 %v1292_v31, %v4710_v27  ;;  %v1406_v43 = vadd.f32 %v1405_v34, %v4714_v28  ;;  %v4799_v25 = vld [vmem:[#allocation11 + $0x100] ss:$8 sps:$4 sm:$0xff]  }
 0x2d2   : > { %v1296_v40 = vpop.f32.mrb[30].mxu1  ;;  %v1409_v41 = vpop.f32.mrb[62].mxu0  ;;  %v1295_v48 = vadd.f32 %v1294_v38, %v4717_v36  ;;  %v1408_v49 = vadd.f32 %v1407_v39, %v4721_v37  ;;  %v3964_v38 = vld [vmem:[#allocation11 + $0x14] ss:$8 sps:$4 sm:$0xff]  }
 0x2d3   : > { %v1297_v44 = vadd.f32 %v1296_v40, %v4710_v27  ;;  %v1410_v45 = vadd.f32 %v1409_v41, %v4714_v28  ;;  %v1298_v46 = vpop.f32.mrb[31].mxu1  ;;  %v1411_v47 = vpop.f32.mrb[63].mxu0  ;;  %v3946_v27 = vld [vmem:[#allocation10 + $0xac] ss:$16 sps:$4 sm:$0xff]   ;;  %v3944_v28 = vld [vmem:[#allocation10 + $0xa8] ss:$16 sps:$4 sm:$0xff]  }
 0x2d4   : > { %v1299_v50 = vadd.f32 %v1298_v46, %v4717_v36  ;;  %v1412_v51 = vadd.f32 %v1411_v47, %v4721_v37  ;;  %2248 = vmatprep.subr.bf16.mxu0 %v3946_v27  ;;  %v3950_v36 = vld [vmem:[#allocation10 + $0xc8] ss:$16 sps:$4 sm:$0xff]   ;;  %v3949_v37 = vld [vmem:[#allocation10 + $0xe4] ss:$16 sps:$4 sm:$0xff]  }
 0x2d5   : > { %v1442_v52 = vpack.c.bf16 %v1297_v44, %v1293_v42  ;;  %v1444_v53 = vpack.c.bf16 %v1410_v45, %v1406_v43  ;;  %2249 = vmatpush1.bf16.msra.mxu0 %v3944_v28  ;;  %2139 = vmatprep.subr.bf16.mxu1 %v3949_v37  ;;  %v4801_v39 = vld [vmem:[#allocation11 + $0x114] ss:$8 sps:$4 sm:$0xff]   ;;  %v3962_v45 = vld [vmem:[#allocation11 + $0x10] ss:$8 sps:$4 sm:$0xff]   ;;  %v3970_v47 = vld [vmem:[#allocation11 + $0x24] ss:$8 sps:$4 sm:$0xff]  }
 0x2d6   : > { %v1443_v54 = vpack.c.bf16 %v1299_v50, %v1295_v48  ;;  %v1445_v55 = vpack.c.bf16 %v1412_v51, %v1408_v49  ;;  %2250 = vmatprep.subr.bf16.mxu0 %v3952_v56  ;;  %2140 = vmatpush1.bf16.msra.mxu1 %v3947_v58  ;;  %v4808_v46 = vld [vmem:[#allocation11 + $0x110] ss:$8 sps:$4 sm:$0xff]   ;;  %v4811_v48 = vld [vmem:[#allocation11 + $0x124] ss:$8 sps:$4 sm:$0xff]   ;;  %v4814_v37 = vld [vmem:[#allocation11 + $0x120] ss:$8 sps:$4 sm:$0xff]  }
 0x2d7   : > { %2779 = vmatprep.subr.bf16.mxu1 %v3958_v60  ;;  %v4817_v60 = vld [vmem:[#allocation11 + $0x134] ss:$8 sps:$4 sm:$0xff]  }
 0x2d8   : > { %1797 = vmatprep.mubr.bf16.mxu1 %v1443_v54  ;;  %1894 = vmatprep.mubr.bf16.mxu0 %v1445_v55 }
 0x2d9   : > { %1798 = vmatmul.mubr.bf16.gmra.mrb[60].mxu1 %v1442_v52  ;;  %1895 = vmatmul.mubr.bf16.gmra.mrb[92].mxu0 %v1444_v53 }
 0x2da   : > { %2157 = vmatprep.mubr.bf16.mxu1 %v4314_v0  ;;  %2270 = vmatprep.mubr.bf16.mxu0 %v4314_v0 }
 0x2db   : > { %2251 = vmatpush1.bf16.msra.mxu0 %v3950_v36  ;;  %v3968_v36 = vld [vmem:[#allocation11 + $0x20] ss:$8 sps:$4 sm:$0xff]  }
 0x2dc   : > { %2252 = vmatprep.subr.bf16.mxu0 %v3955_v57 }
 0x2df   : > { %2253 = vmatpush1.bf16.msra.mxu0 %v3953_v59  ;;  %v3976_v59 = vld [vmem:[#allocation11 + $0x34] ss:$8 sps:$4 sm:$0xff]  }
 0x2e0   : > { %2892 = vmatprep.subr.bf16.mxu0 %v4789_v61 }
 0x374   : > { %v3434_v62 = vpop.f32.mrb[32].mxu1  ;;  %v3498_v63 = vpop.f32.mrb[64].mxu0 }
 0x375   : > { %v3435_v2 = vpop.f32.mrb[33].mxu1  ;;  %v3499_v3 = vpop.f32.mrb[65].mxu0 }
 0x376   : > { %v3436_v4 = vadd.f32 %v3435_v2, %v3434_v62  ;;  %v3500_v5 = vadd.f32 %v3499_v3, %v3498_v63  ;;  %v3437_v6 = vpop.f32.mrb[34].mxu1  ;;  %v3501_v7 = vpop.f32.mrb[66].mxu0 }
 0x377   : > { %v3438_v8 = vpop.f32.mrb[35].mxu1  ;;  %v3502_v9 = vpop.f32.mrb[67].mxu0 }
 0x378   : > { %v1744_v10 = vadd.f32 %v3436_v4, %v4795_v1  ;;  %v3439_v11 = vadd.f32 %v3438_v8, %v3437_v6  ;;  %v3503_v12 = vadd.f32 %v3502_v9, %v3501_v7  ;;  %v4824_v6 = vld [vmem:[#allocation11 + $0x130] ss:$8 sps:$4 sm:$0xff]   ;;  %v3982_v7 = vld [vmem:[#allocation11 + $0x44] ss:$8 sps:$4 sm:$0xff]  }
 0x379   : > { %v4827_v8 = vld [vmem:[#allocation11 + $0x144] ss:$8 sps:$4 sm:$0xff]  }
 0x37a   : > { %v1841_v13 = vadd.f32 %v3500_v5, %v1744_v10  ;;  %v1747_v14 = vadd.f32 %v3439_v11, %v4795_v1  ;;  %v3974_v5 = vld [vmem:[#allocation11 + $0x30] ss:$8 sps:$4 sm:$0xff]  }
 0x37c   : > { %v1844_v15 = vadd.f32 %v3503_v12, %v1747_v14  ;;  %v3440_v16 = vpop.f32.mrb[36].mxu1  ;;  %v3504_v17 = vpop.f32.mrb[68].mxu0 }
 0x37d   : > { %v3441_v18 = vpop.f32.mrb[37].mxu1  ;;  %v3505_v19 = vpop.f32.mrb[69].mxu0 }
 0x37e   : > { %v1903_v20 = vpack.c.bf16 %v1844_v15, %v1841_v13  ;;  %v3442_v21 = vadd.f32 %v3441_v18, %v3440_v16  ;;  %v3506_v22 = vadd.f32 %v3505_v19, %v3504_v17  ;;  %v3443_v23 = vpop.f32.mrb[38].mxu1  ;;  %v3507_v33 = vpop.f32.mrb[70].mxu0  ;;  %v3980_v19 = vld [vmem:[#allocation11 + $0x40] ss:$8 sps:$4 sm:$0xff]  }
 0x37f   : > { %v3444_v31 = vpop.f32.mrb[39].mxu1  ;;  %v3508_v34 = vpop.f32.mrb[71].mxu0 }
 0x380   : > { %v1752_v40 = vadd.f32 %v3442_v21, %v4795_v1  ;;  %v3445_v41 = vadd.f32 %v3444_v31, %v3443_v23  ;;  %v3509_v42 = vadd.f32 %v3508_v34, %v3507_v33  ;;  %2158 = vmatmul.mubr.bf16.vlgmr.msra.gmra.mrb[64].mxu1 %v1903_v20  ;;  %2271 = vmatmul.mubr.bf16.vlgmr.msra.gmra.mrb[96].mxu0 %v1903_v20  ;;  %v4830_v20 = vld [vmem:[#allocation11 + $0x140] ss:$8 sps:$4 sm:$0xff]   ;;  %v3988_v23 = vld [vmem:[#allocation11 + $0x54] ss:$8 sps:$4 sm:$0xff]  }
 0x381   : > { %2167 = vmatprep.mubr.bf16.mxu1 %v4314_v0  ;;  %2280 = vmatprep.mubr.bf16.mxu0 %v4314_v0  ;;  %v4833_v33 = vld [vmem:[#allocation11 + $0x154] ss:$8 sps:$4 sm:$0xff]  }
 0x382   : > { %v1849_v43 = vadd.f32 %v3506_v22, %v1752_v40  ;;  %v1755_v44 = vadd.f32 %v3445_v41, %v4795_v1  ;;  %2780 = vmatpush1.bf16.msra.mxu1 %v3956_v24  ;;  %2893 = vmatpush1.bf16.msra.mxu0 %v4799_v25  ;;  %v3986_v41 = vld [vmem:[#allocation11 + $0x50] ss:$8 sps:$4 sm:$0xff]  }
 0x383   : > { %2781 = vmatprep.subr.bf16.mxu1 %v3964_v38  ;;  %2894 = vmatprep.subr.bf16.mxu0 %v4801_v39 }
 0x384   : > { %v1852_v49 = vadd.f32 %v3509_v42, %v1755_v44  ;;  %v3446_v50 = vpop.f32.mrb[40].mxu1  ;;  %v3510_v51 = vpop.f32.mrb[72].mxu0  ;;  %v4840_v42 = vld [vmem:[#allocation11 + $0x150] ss:$8 sps:$4 sm:$0xff]   ;;  %v4843_v44 = vld [vmem:[#allocation11 + $0x164] ss:$8 sps:$4 sm:$0xff]  }
 0x385   : > { %v3447_v52 = vpop.f32.mrb[41].mxu1  ;;  %v3511_v53 = vpop.f32.mrb[73].mxu0 }
 0x386   : > { %v3448_v54 = vadd.f32 %v3447_v52, %v3446_v50  ;;  %v3512_v55 = vadd.f32 %v3511_v53, %v3510_v51  ;;  %v3449_v27 = vpop.f32.mrb[42].mxu1  ;;  %v3513_v28 = vpop.f32.mrb[74].mxu0  ;;  %v1904_v56 = vpack.c.bf16 %v1852_v49, %v1849_v43  ;;  %2782 = vmatpush1.bf16.msra.mxu1 %v3962_v45  ;;  %2895 = vmatpush1.bf16.msra.mxu0 %v4808_v46  ;;  %v3994_v43 = vld [vmem:[#allocation11 + $0x64] ss:$8 sps:$4 sm:$0xff]  }
 0x387   : > { %v3450_v57 = vpop.f32.mrb[43].mxu1  ;;  %v3514_v58 = vpop.f32.mrb[75].mxu0  ;;  %2783 = vmatprep.subr.bf16.mxu1 %v3970_v47  ;;  %2896 = vmatprep.subr.bf16.mxu0 %v4811_v48 }
 0x388   : > { %v1760_v62 = vadd.f32 %v3448_v54, %v4795_v1  ;;  %v3451_v63 = vadd.f32 %v3450_v57, %v3449_v27  ;;  %v3515_v2 = vadd.f32 %v3514_v58, %v3513_v28  ;;  %2168 = vmatmul.mubr.bf16.gmra.mrb[68].mxu1 %v1904_v56  ;;  %2281 = vmatmul.mubr.bf16.gmra.mrb[100].mxu0 %v1904_v56  ;;  %v3992_v28 = vld [vmem:[#allocation11 + $0x60] ss:$8 sps:$4 sm:$0xff]   ;;  %v4000_v58 = vld [vmem:[#allocation11 + $0x74] ss:$8 sps:$4 sm:$0xff]  }
 0x389   : > { %2177 = vmatprep.mubr.bf16.mxu1 %v4314_v0  ;;  %2290 = vmatprep.mubr.bf16.mxu0 %v4314_v0  ;;  %v4846_v56 = vld [vmem:[#allocation11 + $0x160] ss:$8 sps:$4 sm:$0xff]  }
 0x38a   : > { %v1857_v3 = vadd.f32 %v3512_v55, %v1760_v62  ;;  %v1763_v4 = vadd.f32 %v3451_v63, %v4795_v1  ;;  %2784 = vmatpush1.bf16.msra.mxu1 %v3968_v36  ;;  %2897 = vmatpush1.bf16.msra.mxu0 %v4814_v37 }
 0x38b   : > { %2785 = vmatprep.subr.bf16.mxu1 %v3976_v59  ;;  %2898 = vmatprep.subr.bf16.mxu0 %v4817_v60  ;;  %v4849_v59 = vld [vmem:[#allocation11 + $0x174] ss:$8 sps:$4 sm:$0xff]  }
 0x38c   : > { %v1860_v9 = vadd.f32 %v3515_v2, %v1763_v4  ;;  %v3452_v10 = vpop.f32.mrb[44].mxu1  ;;  %v3516_v11 = vpop.f32.mrb[76].mxu0 }
 0x38d   : > { %v3453_v12 = vpop.f32.mrb[45].mxu1  ;;  %v3517_v13 = vpop.f32.mrb[77].mxu0 }
 0x38e   : > { %v3454_v14 = vadd.f32 %v3453_v12, %v3452_v10  ;;  %v3518_v15 = vadd.f32 %v3517_v13, %v3516_v11  ;;  %v3455_v16 = vpop.f32.mrb[46].mxu1  ;;  %v3519_v17 = vpop.f32.mrb[78].mxu0  ;;  %v1905_v18 = vpack.c.bf16 %v1860_v9, %v1857_v3  ;;  %2786 = vmatpush1.bf16.msra.mxu1 %v3974_v5  ;;  %2899 = vmatpush1.bf16.msra.mxu0 %v4824_v6  ;;  %v3998_v5 = vld [vmem:[#allocation11 + $0x70] ss:$8 sps:$4 sm:$0xff]   ;;  %v4006_v9 = vld [vmem:[#allocation11 + $0x84] ss:$8 sps:$4 sm:$0xff]  }
 0x38f   : > { %v3456_v21 = vpop.f32.mrb[47].mxu1  ;;  %v3520_v22 = vpop.f32.mrb[79].mxu0  ;;  %2787 = vmatprep.subr.bf16.mxu1 %v3982_v7  ;;  %2900 = vmatprep.subr.bf16.mxu0 %v4827_v8  ;;  %v4856_v7 = vld [vmem:[#allocation11 + $0x170] ss:$8 sps:$4 sm:$0xff]   ;;  %v4859_v10 = vld [vmem:[#allocation11 + $0x184] ss:$8 sps:$4 sm:$0xff]  }
 0x390   : > { %v1768_v24 = vadd.f32 %v3454_v14, %v4795_v1  ;;  %v3457_v31 = vadd.f32 %v3456_v21, %v3455_v16  ;;  %v3521_v34 = vadd.f32 %v3520_v22, %v3519_v17  ;;  %2178 = vmatmul.mubr.bf16.gmra.mrb[72].mxu1 %v1905_v18  ;;  %2291 = vmatmul.mubr.bf16.gmra.mrb[104].mxu0 %v1905_v18  ;;  %v4004_v22 = vld [vmem:[#allocation11 + $0x80] ss:$8 sps:$4 sm:$0xff]  }
 0x391   : > { %2187 = vmatprep.mubr.bf16.mxu1 %v4314_v0  ;;  %2300 = vmatprep.mubr.bf16.mxu0 %v4314_v0 }
 0x392   : > { %v1865_v38 = vadd.f32 %v3518_v15, %v1768_v24  ;;  %v1771_v40 = vadd.f32 %v3457_v31, %v4795_v1  ;;  %2788 = vmatpush1.bf16.msra.mxu1 %v3980_v19  ;;  %2901 = vmatpush1.bf16.msra.mxu0 %v4830_v20 }
 0x393   : > { %2789 = vmatprep.subr.bf16.mxu1 %v3988_v23  ;;  %2902 = vmatprep.subr.bf16.mxu0 %v4833_v33  ;;  %v4862_v23 = vld [vmem:[#allocation11 + $0x180] ss:$8 sps:$4 sm:$0xff]  }
 0x394   : > { %v1868_v45 = vadd.f32 %v3521_v34, %v1771_v40  ;;  %v3458_v47 = vpop.f32.mrb[48].mxu1  ;;  %v3522_v49 = vpop.f32.mrb[80].mxu0  ;;  %v4012_v34 = vld [vmem:[#allocation11 + $0x94] ss:$8 sps:$4 sm:$0xff]  }
 0x395   : > { %v3459_v50 = vpop.f32.mrb[49].mxu1  ;;  %v3523_v51 = vpop.f32.mrb[81].mxu0 }
 0x396   : > { %v3460_v52 = vadd.f32 %v3459_v50, %v3458_v47  ;;  %v3524_v53 = vadd.f32 %v3523_v51, %v3522_v49  ;;  %v3461_v54 = vpop.f32.mrb[50].mxu1  ;;  %v3525_v55 = vpop.f32.mrb[82].mxu0  ;;  %v1906_v27 = vpack.c.bf16 %v1868_v45, %v1865_v38  ;;  %2790 = vmatpush1.bf16.msra.mxu1 %v3986_v41  ;;  %2903 = vmatpush1.bf16.msra.mxu0 %v4840_v42  ;;  %v4865_v38 = vld [vmem:[#allocation11 + $0x194] ss:$8 sps:$4 sm:$0xff]   ;;  %v4010_v49 = vld [vmem:[#allocation11 + $0x90] ss:$8 sps:$4 sm:$0xff]  }
 0x397   : > { %v3462_v36 = vpop.f32.mrb[51].mxu1  ;;  %v3526_v57 = vpop.f32.mrb[83].mxu0  ;;  %2791 = vmatprep.subr.bf16.mxu1 %v3994_v43  ;;  %2904 = vmatprep.subr.bf16.mxu0 %v4843_v44  ;;  %v4872_v50 = vld [vmem:[#allocation11 + $0x190] ss:$8 sps:$4 sm:$0xff]   ;;  %v4018_v51 = vld [vmem:[#allocation11 + $0xa4] ss:$8 sps:$4 sm:$0xff]  }
 0x398   : > { %v1776_v62 = vadd.f32 %v3460_v52, %v4795_v1  ;;  %v3463_v63 = vadd.f32 %v3462_v36, %v3461_v54  ;;  %v3527_v2 = vadd.f32 %v3526_v57, %v3525_v55  ;;  %2188 = vmatmul.mubr.bf16.gmra.mrb[76].mxu1 %v1906_v27  ;;  %2301 = vmatmul.mubr.bf16.gmra.mrb[108].mxu0 %v1906_v27  ;;  %v4875_v52 = vld [vmem:[#allocation11 + $0x1a4] ss:$8 sps:$4 sm:$0xff]  }
 0x399   : > { %2197 = vmatprep.mubr.bf16.mxu1 %v4314_v0  ;;  %2310 = vmatprep.mubr.bf16.mxu0 %v4314_v0 }
 0x39a   : > { %v1873_v3 = vadd.f32 %v3524_v53, %v1776_v62  ;;  %v1779_v4 = vadd.f32 %v3463_v63, %v4795_v1  ;;  %2792 = vmatpush1.bf16.msra.mxu1 %v3992_v28  ;;  %2905 = vmatpush1.bf16.msra.mxu0 %v4846_v56 }
 0x39b   : > { %2793 = vmatprep.subr.bf16.mxu1 %v4000_v58  ;;  %2906 = vmatprep.subr.bf16.mxu0 %v4849_v59 }
 0x39c   : > { %v1876_v11 = vadd.f32 %v3527_v2, %v1779_v4  ;;  %v3464_v12 = vpop.f32.mrb[52].mxu1  ;;  %v3528_v13 = vpop.f32.mrb[84].mxu0  ;;  %v4016_v2 = vld [vmem:[#allocation11 + $0xa0] ss:$8 sps:$4 sm:$0xff]  }
 0x39d   : > { %v3465_v14 = vpop.f32.mrb[53].mxu1  ;;  %v3529_v15 = vpop.f32.mrb[85].mxu0 }
 0x39e   : > { %v3466_v16 = vadd.f32 %v3465_v14, %v3464_v12  ;;  %v3530_v17 = vadd.f32 %v3529_v15, %v3528_v13  ;;  %v3467_v18 = vpop.f32.mrb[54].mxu1  ;;  %v3531_v19 = vpop.f32.mrb[86].mxu0  ;;  %v1907_v21 = vpack.c.bf16 %v1876_v11, %v1873_v3  ;;  %2794 = vmatpush1.bf16.msra.mxu1 %v3998_v5  ;;  %2907 = vmatpush1.bf16.msra.mxu0 %v4856_v7  ;;  %v4878_v3 = vld [vmem:[#allocation11 + $0x1a0] ss:$8 sps:$4 sm:$0xff]   ;;  %v4881_v11 = vld [vmem:[#allocation11 + $0x1b4] ss:$8 sps:$4 sm:$0xff]  }
 0x39f   : > { %v3468_v24 = vpop.f32.mrb[55].mxu1  ;;  %v3532_v31 = vpop.f32.mrb[87].mxu0  ;;  %2795 = vmatprep.subr.bf16.mxu1 %v4006_v9  ;;  %2908 = vmatprep.subr.bf16.mxu0 %v4859_v10  ;;  %v4024_v9 = vld [vmem:[#allocation11 + $0xb4] ss:$8 sps:$4 sm:$0xff]  }
 0x3a0   : > { %v1784_v40 = vadd.f32 %v3466_v16, %v4795_v1  ;;  %v3469_v41 = vadd.f32 %v3468_v24, %v3467_v18  ;;  %v3533_v43 = vadd.f32 %v3532_v31, %v3531_v19  ;;  %2198 = vmatmul.mubr.bf16.gmra.mrb[80].mxu1 %v1907_v21  ;;  %2311 = vmatmul.mubr.bf16.gmra.mrb[112].mxu0 %v1907_v21  ;;  %v4888_v18 = vld [vmem:[#allocation11 + $0x1b0] ss:$8 sps:$4 sm:$0xff]   ;;  %v4030_v19 = vld [vmem:[#allocation11 + $0xc4] ss:$8 sps:$4 sm:$0xff]  }
 0x3a1   : > { %2207 = vmatprep.mubr.bf16.mxu1 %v4314_v0  ;;  %2320 = vmatprep.mubr.bf16.mxu0 %v4314_v0  ;;  %v4891_v21 = vld [vmem:[#allocation11 + $0x1c4] ss:$8 sps:$4 sm:$0xff]  }
 0x3a2   : > { %v1881_v45 = vadd.f32 %v3530_v17, %v1784_v40  ;;  %v1787_v47 = vadd.f32 %v3469_v41, %v4795_v1  ;;  %2796 = vmatpush1.bf16.msra.mxu1 %v4004_v22  ;;  %2909 = vmatpush1.bf16.msra.mxu0 %v4862_v23  ;;  %v4022_v17 = vld [vmem:[#allocation11 + $0xb0] ss:$8 sps:$4 sm:$0xff]  }
 0x3a3   : > { %2797 = vmatprep.subr.bf16.mxu1 %v4012_v34  ;;  %2910 = vmatprep.subr.bf16.mxu0 %v4865_v38 }
 0x3a4   : > { %v1884_v53 = vadd.f32 %v3533_v43, %v1787_v47  ;;  %v3470_v54 = vpop.f32.mrb[56].mxu1  ;;  %v3534_v55 = vpop.f32.mrb[88].mxu0 }
 0x3a5   : > { %v3471_v27 = vpop.f32.mrb[57].mxu1  ;;  %v3535_v28 = vpop.f32.mrb[89].mxu0 }
 0x3a6   : > { %v3472_v36 = vadd.f32 %v3471_v27, %v3470_v54  ;;  %v3536_v57 = vadd.f32 %v3535_v28, %v3534_v55  ;;  %v3473_v58 = vpop.f32.mrb[58].mxu1  ;;  %v3537_v62 = vpop.f32.mrb[90].mxu0  ;;  %v1908_v63 = vpack.c.bf16 %v1884_v53, %v1881_v45  ;;  %2798 = vmatpush1.bf16.msra.mxu1 %v4010_v49  ;;  %2911 = vmatpush1.bf16.msra.mxu0 %v4872_v50  ;;  %v4894_v53 = vld [vmem:[#allocation11 + $0x1c0] ss:$8 sps:$4 sm:$0xff]   ;;  %v4036_v27 = vld [vmem:[#allocation11 + $0xd4] ss:$8 sps:$4 sm:$0xff]  }
 0x3a7   : > { %v3474_v4 = vpop.f32.mrb[59].mxu1  ;;  %v3538_v5 = vpop.f32.mrb[91].mxu0  ;;  %2799 = vmatprep.subr.bf16.mxu1 %v4018_v51  ;;  %2912 = vmatprep.subr.bf16.mxu0 %v4875_v52  ;;  %v4028_v51 = vld [vmem:[#allocation11 + $0xc0] ss:$8 sps:$4 sm:$0xff]   ;;  %v4897_v28 = vld [vmem:[#allocation11 + $0x1d4] ss:$8 sps:$4 sm:$0xff]  }
 0x3a8   : > { %v1792_v12 = vadd.f32 %v3472_v36, %v4795_v1  ;;  %v3475_v13 = vadd.f32 %v3474_v4, %v3473_v58  ;;  %v3539_v14 = vadd.f32 %v3538_v5, %v3537_v62  ;;  %2208 = vmatmul.mubr.bf16.gmra.mrb[84].mxu1 %v1908_v63  ;;  %2321 = vmatmul.mubr.bf16.gmra.mrb[116].mxu0 %v1908_v63  ;;  %v4904_v4 = vld [vmem:[#allocation11 + $0x1d0] ss:$8 sps:$4 sm:$0xff]  }
 0x3a9   : > { %2217 = vmatprep.mubr.bf16.mxu1 %v4314_v0  ;;  %2330 = vmatprep.mubr.bf16.mxu0 %v4314_v0 }
 0x3aa   : > { %v1889_v15 = vadd.f32 %v3536_v57, %v1792_v12  ;;  %v1795_v16 = vadd.f32 %v3475_v13, %v4795_v1  ;;  %2800 = vmatpush1.bf16.msra.mxu1 %v4016_v2  ;;  %2913 = vmatpush1.bf16.msra.mxu0 %v4878_v3  ;;  %v4034_v2 = vld [vmem:[#allocation11 + $0xd0] ss:$8 sps:$4 sm:$0xff]   ;;  %v4908_v12 = vld [vmem:[#allocation11 + $0x1e4] ss:$8 sps:$4 sm:$0xff]   ;;  %v4910_v13 = vld [vmem:[#allocation11 + $0x1e0] ss:$8 sps:$4 sm:$0xff]  }
 0x3ab   : > { %2801 = vmatprep.subr.bf16.mxu1 %v4024_v9  ;;  %2914 = vmatprep.subr.bf16.mxu0 %v4881_v11 }
 0x3ac   : > { %v1892_v22 = vadd.f32 %v3539_v14, %v1795_v16  ;;  %v3476_v24 = vpop.f32.mrb[60].mxu1  ;;  %v3540_v31 = vpop.f32.mrb[92].mxu0  ;;  %v4048_v14 = vld [vmem:[#allocation11 + $0xf4] ss:$8 sps:$4 sm:$0xff]   ;;  %v4046_v16 = vld [vmem:[#allocation11 + $0xf0] ss:$8 sps:$4 sm:$0xff]  }
 0x3ad   : > { %v3477_v34 = vpop.f32.mrb[61].mxu1  ;;  %v3541_v40 = vpop.f32.mrb[93].mxu0 }
 0x3ae   : > { %v3478_v41 = vadd.f32 %v3477_v34, %v3476_v24  ;;  %v3542_v43 = vadd.f32 %v3541_v40, %v3540_v31  ;;  %v3479_v45 = vpop.f32.mrb[62].mxu1  ;;  %v3543_v47 = vpop.f32.mrb[94].mxu0  ;;  %v1909_v49 = vpack.c.bf16 %v1892_v22, %v1889_v15  ;;  %2802 = vmatpush1.bf16.msra.mxu1 %v4022_v17  ;;  %2915 = vmatpush1.bf16.msra.mxu0 %v4888_v18  ;;  %v4914_v15 = vld [vmem:[#allocation11 + $0x1f4] ss:$8 sps:$4 sm:$0xff]   ;;  %v4916_v17 = vld [vmem:[#allocation11 + $0x1f0] ss:$8 sps:$4 sm:$0xff]  }
 0x3af   : > { %v3480_v54 = vpop.f32.mrb[63].mxu1  ;;  %v3544_v55 = vpop.f32.mrb[95].mxu0  ;;  %2803 = vmatprep.subr.bf16.mxu1 %v4030_v19  ;;  %2916 = vmatprep.subr.bf16.mxu0 %v4891_v21  ;;  %v1943_v19 = vld [vmem:[%s5206_s29] sm:$0xf]  ;;  %s4226_s29 = sshll.u32 %s4315_s26, 4  ;;  %s4227_s29 = int_to_ptr.vmem [resolvable:$false] %s4226_s29 }
 0x3b0   : > { %v1800_v36 = vadd.f32 %v3478_v41, %v4795_v1  ;;  %v3481_v57 = vadd.f32 %v3480_v54, %v3479_v45  ;;  %v3545_v58 = vadd.f32 %v3544_v55, %v3543_v47  ;;  %2218 = vmatmul.mubr.bf16.gmra.mrb[88].mxu1 %v1909_v49  ;;  %2331 = vmatmul.mubr.bf16.gmra.mrb[120].mxu0 %v1909_v49  ;;  %s4228_s27 = scalar_lea.vmem %s4227_s29, 8192  ;;  %p4229_p11 = scmp.lt.s32.totalorder %s5112_s1, %s4227_s29 }
 0x3b1   : > { %2227 = vmatprep.mubr.bf16.mxu1 %v4314_v0  ;;  %2340 = vmatprep.mubr.bf16.mxu0 %v4314_v0  ;;  %v4042_v0 = vld [vmem:[#allocation11 + $0xe4] ss:$8 sps:$4 sm:$0xff]   ;;  %v4925_v22 = vrot.slane %v1943_v19, %v4658_v30  ;;  %v4929_v24 = vrot.slane %v1943_v19, %v858_v35  ;;  %v4932_v40 = vrot.slane %v1943_v19, %v4664_v32  ;;  %p4230_p12 = scmp.lt.s32.totalorder %s4228_s27, %s4222_s25 }
 0x3b2   : > { %v1897_v62 = vadd.f32 %v3542_v43, %v1800_v36  ;;  %v1803_v63 = vadd.f32 %v3481_v57, %v4795_v1  ;;  %2804 = vmatpush1.bf16.msra.mxu1 %v4028_v51  ;;  %2917 = vmatpush1.bf16.msra.mxu0 %v4894_v53  ;;  %v4040_v1 = vld [vmem:[#allocation11 + $0xe0] ss:$8 sps:$4 sm:$0xff]   ;;  %v4936_v41 = vrot.slane %v1943_v19, %v862_v26 }
 0x3b3   : > { %2805 = vmatprep.subr.bf16.mxu1 %v4036_v27  ;;  %2918 = vmatprep.subr.bf16.mxu0 %v4897_v28  ;;  %p4231_p13 = por %p4230_p12, %p4229_p11 }
 0x3b4   : > { %v1900_v5 = vadd.f32 %v3545_v58, %v1803_v63 }
 0x3b5   : > { %p4232_p8 = pnand %p4231_p13, %p4225_p1 }
 0x3b6   : > { %v1910_v9 = vpack.c.bf16 %v1900_v5, %v1897_v62  ;;  %2806 = vmatpush1.bf16.msra.mxu1 %v4034_v2  ;;  %2919 = vmatpush1.bf16.msra.mxu0 %v4904_v4 }
 0x3b7   : > { %2807 = vmatprep.subr.bf16.mxu1 %v4042_v0  ;;  %2920 = vmatprep.subr.bf16.mxu0 %v4908_v12 }
 0x3b8   : > { %2228 = vmatmul.mubr.bf16.gmra.mrb[92].mxu1 %v1910_v9  ;;  %2341 = vmatmul.mubr.bf16.gmra.mrb[124].mxu0 %v1910_v9 }
 0x3ba   : > { %2808 = vmatpush1.bf16.msra.mxu1 %v4040_v1  ;;  %2921 = vmatpush1.bf16.msra.mxu0 %v4910_v13 }
 0x3bb   : > { %2809 = vmatprep.subr.bf16.mxu1 %v4048_v14  ;;  %2922 = vmatprep.subr.bf16.mxu0 %v4914_v15 }
 0x3be   : > { %2810 = vmatpush1.bf16.msra.mxu1 %v4046_v16  ;;  %2923 = vmatpush1.bf16.msra.mxu0 %v4916_v17 }
 0x3bf   : > { %3546 = vmatprep.subr.bf16.mxu1 %v4789_v61 }
 0x453   : > { %v2159_v31 = vpop.f32.mrb[64].mxu1  ;;  %v2272_v34 = vpop.f32.mrb[96].mxu0 }
 0x454   : > { %v2161_v61 = vpop.f32.mrb[65].mxu1  ;;  %v2274_v43 = vpop.f32.mrb[97].mxu0  ;;  %v2160_v49 = vadd.f32 %v2159_v31, %v4925_v22  ;;  %v2273_v51 = vadd.f32 %v2272_v34, %v4929_v24 }
 0x455   : > { %v2163_v45 = vpop.f32.mrb[66].mxu1  ;;  %v2276_v47 = vpop.f32.mrb[98].mxu0  ;;  %v2162_v36 = vadd.f32 %v2161_v61, %v4932_v40  ;;  %v2275_v29 = vadd.f32 %v2274_v43, %v4936_v41 }
 0x456   : > { %v2164_v35 = vadd.f32 %v2163_v45, %v4925_v22  ;;  %v2277_v54 = vadd.f32 %v2276_v47, %v4929_v24  ;;  %v2165_v55 = vpop.f32.mrb[67].mxu1  ;;  %v2278_v27 = vpop.f32.mrb[99].mxu0 }
 0x457   : > { %v2166_v26 = vadd.f32 %v2165_v55, %v4932_v40  ;;  %v2279_v57 = vadd.f32 %v2278_v27, %v4936_v41 }
 0x458   : > { %v2351_v58 = vpack.c.bf16 %v2164_v35, %v2160_v49  ;;  %v2353_v62 = vpack.c.bf16 %v2277_v54, %v2273_v51 }
 0x459   : > { %v2352_v63 = vpack.c.bf16 %v2166_v26, %v2162_v36  ;;  %v2354_v2 = vpack.c.bf16 %v2279_v57, %v2275_v29 }
 0x45b   : > { %v2169_v5 = vpop.f32.mrb[68].mxu1  ;;  %v2282_v9 = vpop.f32.mrb[100].mxu0  ;;  %2811 = vmatprep.mubr.bf16.mxu1 %v2352_v63  ;;  %2924 = vmatprep.mubr.bf16.mxu0 %v2354_v2 }
 0x45c   : > { %v2171_v0 = vpop.f32.mrb[69].mxu1  ;;  %v2284_v1 = vpop.f32.mrb[101].mxu0  ;;  %2812 = vmatmul.mubr.bf16.vlgmr.msra.gmra.mrb[96].mxu1 %v2351_v58  ;;  %2925 = vmatmul.mubr.bf16.vlgmr.msra.gmra.mrb[128].mxu0 %v2353_v62  ;;  %v2170_v19 = vadd.f32 %v2169_v5, %v4925_v22  ;;  %v2283_v31 = vadd.f32 %v2282_v9, %v4929_v24 }
 0x45d   : > { %3562 = vmatpush1.bf16.msra.mxu1 %v4799_v25  ;;  %v2173_v14 = vpop.f32.mrb[70].mxu1  ;;  %v2286_v16 = vpop.f32.mrb[102].mxu0  ;;  %v2172_v47 = vadd.f32 %v2171_v0, %v4932_v40  ;;  %v2285_v49 = vadd.f32 %v2284_v1, %v4936_v41 }
 0x45e   : > { %v2174_v34 = vadd.f32 %v2173_v14, %v4925_v22  ;;  %v2287_v61 = vadd.f32 %v2286_v16, %v4929_v24  ;;  %v2175_v43 = vpop.f32.mrb[71].mxu1  ;;  %v2288_v45 = vpop.f32.mrb[103].mxu0  ;;  %3547 = vmatprep.subr.bf16.mxu1 %v4801_v39 }
 0x45f   : > { %v2176_v25 = vadd.f32 %v2175_v43, %v4932_v40  ;;  %v2289_v51 = vadd.f32 %v2288_v45, %v4936_v41 }
 0x460   : > { %v2355_v35 = vpack.c.bf16 %v2174_v34, %v2170_v19  ;;  %v2357_v54 = vpack.c.bf16 %v2287_v61, %v2283_v31 }
 0x461   : > { %v2356_v55 = vpack.c.bf16 %v2176_v25, %v2172_v47  ;;  %v2358_v27 = vpack.c.bf16 %v2289_v51, %v2285_v49  ;;  %3563 = vmatpush1.bf16.msra.mxu1 %v4808_v46 }
 0x462   : > { %3548 = vmatprep.subr.bf16.mxu1 %v4811_v48 }
 0x463   : > { %v2179_v36 = vpop.f32.mrb[72].mxu1  ;;  %v2292_v29 = vpop.f32.mrb[104].mxu0  ;;  %2821 = vmatprep.mubr.bf16.mxu1 %v2356_v55  ;;  %2934 = vmatprep.mubr.bf16.mxu0 %v2358_v27 }
 0x464   : > { %v2181_v39 = vpop.f32.mrb[73].mxu1  ;;  %v2294_v26 = vpop.f32.mrb[105].mxu0  ;;  %2822 = vmatmul.mubr.bf16.gmra.mrb[100].mxu1 %v2355_v35  ;;  %2935 = vmatmul.mubr.bf16.gmra.mrb[132].mxu0 %v2357_v54  ;;  %v2180_v62 = vadd.f32 %v2179_v36, %v4925_v22  ;;  %v2293_v63 = vadd.f32 %v2292_v29, %v4929_v24 }
 0x465   : > { %3564 = vmatpush1.bf16.msra.mxu1 %v4814_v37  ;;  %v2183_v57 = vpop.f32.mrb[74].mxu1  ;;  %v2296_v58 = vpop.f32.mrb[106].mxu0  ;;  %v2182_v9 = vadd.f32 %v2181_v39, %v4932_v40  ;;  %v2295_v0 = vadd.f32 %v2294_v26, %v4936_v41 }
 0x466   : > { %v2184_v46 = vadd.f32 %v2183_v57, %v4925_v22  ;;  %v2297_v48 = vadd.f32 %v2296_v58, %v4929_v24  ;;  %v2185_v2 = vpop.f32.mrb[75].mxu1  ;;  %v2298_v5 = vpop.f32.mrb[107].mxu0  ;;  %3549 = vmatprep.subr.bf16.mxu1 %v4817_v60 }
 0x467   : > { %v2186_v37 = vadd.f32 %v2185_v2, %v4932_v40  ;;  %v2299_v1 = vadd.f32 %v2298_v5, %v4936_v41 }
 0x468   : > { %v2359_v14 = vpack.c.bf16 %v2184_v46, %v2180_v62  ;;  %v2361_v16 = vpack.c.bf16 %v2297_v48, %v2293_v63 }
 0x469   : > { %v2360_v19 = vpack.c.bf16 %v2186_v37, %v2182_v9  ;;  %v2362_v31 = vpack.c.bf16 %v2299_v1, %v2295_v0  ;;  %3565 = vmatpush1.bf16.msra.mxu1 %v4824_v6 }
 0x46a   : > { %3550 = vmatprep.subr.bf16.mxu1 %v4827_v8 }
 0x46b   : > { %v2189_v34 = vpop.f32.mrb[76].mxu1  ;;  %v2302_v61 = vpop.f32.mrb[108].mxu0  ;;  %2831 = vmatprep.mubr.bf16.mxu1 %v2360_v19  ;;  %2944 = vmatprep.mubr.bf16.mxu0 %v2362_v31 }
 0x46c   : > { %v2191_v60 = vpop.f32.mrb[77].mxu1  ;;  %v2304_v43 = vpop.f32.mrb[109].mxu0  ;;  %2832 = vmatmul.mubr.bf16.gmra.mrb[104].mxu1 %v2359_v14  ;;  %2945 = vmatmul.mubr.bf16.gmra.mrb[136].mxu0 %v2361_v16  ;;  %v2190_v49 = vadd.f32 %v2189_v34, %v4925_v22  ;;  %v2303_v25 = vadd.f32 %v2302_v61, %v4929_v24 }
 0x46d   : > { %3566 = vmatpush1.bf16.msra.mxu1 %v4830_v20  ;;  %v2193_v45 = vpop.f32.mrb[78].mxu1  ;;  %v2306_v47 = vpop.f32.mrb[110].mxu0  ;;  %v2192_v54 = vadd.f32 %v2191_v60, %v4932_v40  ;;  %v2305_v55 = vadd.f32 %v2304_v43, %v4936_v41 }
 0x46e   : > { %v2194_v6 = vadd.f32 %v2193_v45, %v4925_v22  ;;  %v2307_v8 = vadd.f32 %v2306_v47, %v4929_v24  ;;  %v2195_v51 = vpop.f32.mrb[79].mxu1  ;;  %v2308_v35 = vpop.f32.mrb[111].mxu0  ;;  %3551 = vmatprep.subr.bf16.mxu1 %v4833_v33 }
 0x46f   : > { %v2196_v20 = vadd.f32 %v2195_v51, %v4932_v40  ;;  %v2309_v27 = vadd.f32 %v2308_v35, %v4936_v41 }
 0x470   : > { %v2363_v36 = vpack.c.bf16 %v2194_v6, %v2190_v49  ;;  %v2365_v29 = vpack.c.bf16 %v2307_v8, %v2303_v25 }
 0x471   : > { %v2364_v39 = vpack.c.bf16 %v2196_v20, %v2192_v54  ;;  %v2366_v26 = vpack.c.bf16 %v2309_v27, %v2305_v55  ;;  %3567 = vmatpush1.bf16.msra.mxu1 %v4840_v42 }
 0x472   : > { %3552 = vmatprep.subr.bf16.mxu1 %v4843_v44 }
 0x473   : > { %v2199_v57 = vpop.f32.mrb[80].mxu1  ;;  %v2312_v58 = vpop.f32.mrb[112].mxu0  ;;  %2841 = vmatprep.mubr.bf16.mxu1 %v2364_v39  ;;  %2954 = vmatprep.mubr.bf16.mxu0 %v2366_v26 }
 0x474   : > { %v2201_v33 = vpop.f32.mrb[81].mxu1  ;;  %v2314_v62 = vpop.f32.mrb[113].mxu0  ;;  %2842 = vmatmul.mubr.bf16.gmra.mrb[108].mxu1 %v2363_v36  ;;  %2955 = vmatmul.mubr.bf16.gmra.mrb[140].mxu0 %v2365_v29  ;;  %v2200_v48 = vadd.f32 %v2199_v57, %v4925_v22  ;;  %v2313_v2 = vadd.f32 %v2312_v58, %v4929_v24 }
 0x475   : > { %3568 = vmatpush1.bf16.msra.mxu1 %v4846_v56  ;;  %v2203_v63 = vpop.f32.mrb[82].mxu1  ;;  %v2316_v46 = vpop.f32.mrb[114].mxu0  ;;  %v2202_v0 = vadd.f32 %v2201_v33, %v4932_v40  ;;  %v2315_v37 = vadd.f32 %v2314_v62, %v4936_v41 }
 0x476   : > { %v2204_v42 = vadd.f32 %v2203_v63, %v4925_v22  ;;  %v2317_v44 = vadd.f32 %v2316_v46, %v4929_v24  ;;  %v2205_v5 = vpop.f32.mrb[83].mxu1  ;;  %v2318_v9 = vpop.f32.mrb[115].mxu0  ;;  %3553 = vmatprep.subr.bf16.mxu1 %v4849_v59 }
 0x477   : > { %v2206_v56 = vadd.f32 %v2205_v5, %v4932_v40  ;;  %v2319_v1 = vadd.f32 %v2318_v9, %v4936_v41 }
 0x478   : > { %v2367_v14 = vpack.c.bf16 %v2204_v42, %v2200_v48  ;;  %v2369_v16 = vpack.c.bf16 %v2317_v44, %v2313_v2 }
 0x479   : > { %v2368_v19 = vpack.c.bf16 %v2206_v56, %v2202_v0  ;;  %v2370_v31 = vpack.c.bf16 %v2319_v1, %v2315_v37  ;;  %3569 = vmatpush1.bf16.msra.mxu1 %v4856_v7 }
 0x47a   : > { %3554 = vmatprep.subr.bf16.mxu1 %v4859_v10 }
 0x47b   : > { %v2209_v34 = vpop.f32.mrb[84].mxu1  ;;  %v2322_v61 = vpop.f32.mrb[116].mxu0  ;;  %2851 = vmatprep.mubr.bf16.mxu1 %v2368_v19  ;;  %2964 = vmatprep.mubr.bf16.mxu0 %v2370_v31 }
 0x47c   : > { %v2211_v59 = vpop.f32.mrb[85].mxu1  ;;  %v2324_v60 = vpop.f32.mrb[117].mxu0  ;;  %2852 = vmatmul.mubr.bf16.gmra.mrb[112].mxu1 %v2367_v14  ;;  %2965 = vmatmul.mubr.bf16.gmra.mrb[144].mxu0 %v2369_v16  ;;  %v2210_v47 = vadd.f32 %v2209_v34, %v4925_v22  ;;  %v2323_v49 = vadd.f32 %v2322_v61, %v4929_v24 }
 0x47d   : > { %3570 = vmatpush1.bf16.msra.mxu1 %v4862_v23  ;;  %v2213_v43 = vpop.f32.mrb[86].mxu1  ;;  %v2326_v45 = vpop.f32.mrb[118].mxu0  ;;  %v2212_v8 = vadd.f32 %v2211_v59, %v4932_v40  ;;  %v2325_v51 = vadd.f32 %v2324_v60, %v4936_v41 }
 0x47e   : > { %v2214_v7 = vadd.f32 %v2213_v43, %v4925_v22  ;;  %v2327_v10 = vadd.f32 %v2326_v45, %v4929_v24  ;;  %v2215_v25 = vpop.f32.mrb[87].mxu1  ;;  %v2328_v6 = vpop.f32.mrb[119].mxu0  ;;  %3555 = vmatprep.subr.bf16.mxu1 %v4865_v38 }
 0x47f   : > { %v2216_v23 = vadd.f32 %v2215_v25, %v4932_v40  ;;  %v2329_v35 = vadd.f32 %v2328_v6, %v4936_v41 }
 0x480   : > { %v2371_v54 = vpack.c.bf16 %v2214_v7, %v2210_v47  ;;  %v2373_v55 = vpack.c.bf16 %v2327_v10, %v2323_v49 }
 0x481   : > { %v2372_v20 = vpack.c.bf16 %v2216_v23, %v2212_v8  ;;  %v2374_v27 = vpack.c.bf16 %v2329_v35, %v2325_v51  ;;  %3571 = vmatpush1.bf16.msra.mxu1 %v4872_v50 }
 0x482   : > { %3556 = vmatprep.subr.bf16.mxu1 %v4875_v52 }
 0x483   : > { %v2219_v36 = vpop.f32.mrb[88].mxu1  ;;  %v2332_v29 = vpop.f32.mrb[120].mxu0  ;;  %2861 = vmatprep.mubr.bf16.mxu1 %v2372_v20  ;;  %2974 = vmatprep.mubr.bf16.mxu0 %v2374_v27 }
 0x484   : > { %v2333_v38 = vadd.f32 %v2332_v29, %v4929_v24  ;;  %v2221_v39 = vpop.f32.mrb[89].mxu1  ;;  %v2334_v26 = vpop.f32.mrb[121].mxu0  ;;  %2862 = vmatmul.mubr.bf16.gmra.mrb[116].mxu1 %v2371_v54  ;;  %2975 = vmatmul.mubr.bf16.gmra.mrb[148].mxu0 %v2373_v55  ;;  %v2220_v33 = vadd.f32 %v2219_v36, %v4925_v22 }
 0x485   : > { %3572 = vmatpush1.bf16.msra.mxu1 %v4878_v3  ;;  %v2223_v57 = vpop.f32.mrb[90].mxu1  ;;  %v2336_v58 = vpop.f32.mrb[122].mxu0  ;;  %v2222_v46 = vadd.f32 %v2221_v39, %v4932_v40  ;;  %v2335_v48 = vadd.f32 %v2334_v26, %v4936_v41 }
 0x486   : > { %v2224_v50 = vadd.f32 %v2223_v57, %v4925_v22  ;;  %v2337_v52 = vadd.f32 %v2336_v58, %v4929_v24  ;;  %v2225_v62 = vpop.f32.mrb[91].mxu1  ;;  %v2338_v63 = vpop.f32.mrb[123].mxu0  ;;  %3557 = vmatprep.subr.bf16.mxu1 %v4881_v11 }
 0x487   : > { %v2226_v2 = vadd.f32 %v2225_v62, %v4932_v40  ;;  %v2339_v3 = vadd.f32 %v2338_v63, %v4936_v41 }
 0x488   : > { %v2375_v42 = vpack.c.bf16 %v2224_v50, %v2220_v33  ;;  %v2377_v44 = vpack.c.bf16 %v2337_v52, %v2333_v38 }
 0x489   : > { %v2376_v5 = vpack.c.bf16 %v2226_v2, %v2222_v46  ;;  %v2378_v9 = vpack.c.bf16 %v2339_v3, %v2335_v48  ;;  %3573 = vmatpush1.bf16.msra.mxu1 %v4888_v18 }
 0x48a   : > { %3558 = vmatprep.subr.bf16.mxu1 %v4891_v21 }
 0x48b   : > { %v2229_v0 = vpop.f32.mrb[92].mxu1  ;;  %v2342_v37 = vpop.f32.mrb[124].mxu0  ;;  %2871 = vmatprep.mubr.bf16.mxu1 %v2376_v5 }
 0x48c   : > { %v2343_v11 = vadd.f32 %v2342_v37, %v4929_v24  ;;  %v2231_v56 = vpop.f32.mrb[93].mxu1  ;;  %v2344_v1 = vpop.f32.mrb[125].mxu0  ;;  %2872 = vmatmul.mubr.bf16.gmra.mrb[120].mxu1 %v2375_v42  ;;  %v2230_v31 = vadd.f32 %v2229_v0, %v4925_v22 }
 0x48d   : > { %v2345_v14 = vadd.f32 %v2344_v1, %v4936_v41  ;;  %3574 = vmatpush1.bf16.msra.mxu1 %v4894_v53  ;;  %v2233_v16 = vpop.f32.mrb[94].mxu1  ;;  %v2346_v19 = vpop.f32.mrb[126].mxu0  ;;  %v2232_v59 = vadd.f32 %v2231_v56, %v4932_v40 }
 0x48e   : > { %v2234_v18 = vadd.f32 %v2233_v16, %v4925_v22  ;;  %v2347_v21 = vadd.f32 %v2346_v19, %v4929_v24  ;;  %v2235_v34 = vpop.f32.mrb[95].mxu1  ;;  %v2348_v61 = vpop.f32.mrb[127].mxu0  ;;  %3559 = vmatprep.subr.bf16.mxu1 %v4897_v28  ;;  %v2447_v28 = vld [vmem:[%s5207_s14] sm:$0x3] }
 0x48f   : > { %v2236_v60 = vadd.f32 %v2235_v34, %v4932_v40  ;;  %v2349_v43 = vadd.f32 %v2348_v61, %v4936_v41 }
 0x490   : > { %v2379_v45 = vpack.c.bf16 %v2234_v18, %v2230_v31  ;;  %v2381_v53 = vpack.c.bf16 %v2347_v21, %v2343_v11 }
 0x491   : > { %v2380_v47 = vpack.c.bf16 %v2236_v60, %v2232_v59  ;;  %v2382_v49 = vpack.c.bf16 %v2349_v43, %v2345_v14  ;;  %3575 = vmatpush1.bf16.msra.mxu1 %v4904_v4  ;;  %v5037_v4 = vrot.slane %v2447_v28, %v4658_v30 }
 0x492   : > { %3560 = vmatprep.subr.bf16.mxu1 %v4908_v12  ;;  %v5040_v12 = vrot.slane %v2447_v28, %v4664_v32 }
 0x493   : > { %2881 = vmatprep.mubr.bf16.mxu1 %v2380_v47 }
 0x494   : > { %2882 = vmatmul.mubr.bf16.gmra.mrb[124].mxu1 %v2379_v45 }
 0x495   : > { %3576 = vmatpush1.bf16.msra.mxu1 %v4910_v13  ;;  %2984 = vmatprep.mubr.bf16.mxu1 %v2378_v9 }
 0x496   : > { %3561 = vmatprep.subr.bf16.mxu1 %v4914_v15 }
 0x499   : > { %3577 = vmatpush1.bf16.msra.mxu1 %v4916_v17 }
 0x49c   : > { %2985 = vmatmul.mubr.bf16.vlgmr.msra.gmra.mrb[120].mxu1 %v2377_v44 }
 0x49d   : > { %2994 = vmatprep.mubr.bf16.mxu1 %v2382_v49 }
 0x4a4   : > { %2995 = vmatmul.mubr.bf16.gmra.mrb[124].mxu1 %v2381_v53 }
 0x52f   : > { %v2813_v13 = vpop.f32.mrb[96].mxu1  ;;  %v2926_v22 = vpop.f32.mrb[128].mxu0 }
 0x530   : > { %v2814_v15 = vadd.f32 %v2813_v13, %v5037_v4  ;;  %v2815_v24 = vpop.f32.mrb[97].mxu1  ;;  %v2928_v17 = vpop.f32.mrb[129].mxu0 }
 0x531   : > { %v2816_v40 = vadd.f32 %v2815_v24, %v5040_v12  ;;  %v2817_v41 = vpop.f32.mrb[98].mxu1  ;;  %v2930_v7 = vpop.f32.mrb[130].mxu0 }
 0x532   : > { %v2927_v10 = vadd.f32 %v2926_v22, %v2814_v15  ;;  %v2818_v25 = vadd.f32 %v2817_v41, %v5037_v4  ;;  %v2819_v6 = vpop.f32.mrb[99].mxu1  ;;  %v2932_v30 = vpop.f32.mrb[131].mxu0 }
 0x533   : > { %v2929_v8 = vadd.f32 %v2928_v17, %v2816_v40  ;;  %v2820_v32 = vadd.f32 %v2819_v6, %v5040_v12 }
 0x534   : > { %3005 = vst [vmem:[%s5047_s5] sm:$0xff] %v2927_v10  ;;  %v2931_v51 = vadd.f32 %v2930_v7, %v2818_v25 }
 0x535   : > { %3006 = vst [vmem:[%s5047_s5 + $0x8] sm:$0xff] %v2929_v8  ;;  %v2933_v23 = vadd.f32 %v2932_v30, %v2820_v32 }
 0x536   : > { %3007 = vst [vmem:[%s5047_s5 + $0x10] sm:$0xff] %v2931_v51 }
 0x537   : > { %3008 = vst [vmem:[%s5047_s5 + $0x18] sm:$0xff] %v2933_v23  ;;  %v2823_v35 = vpop.f32.mrb[100].mxu1  ;;  %v2936_v54 = vpop.f32.mrb[132].mxu0 }
 0x538   : > { %v2824_v55 = vadd.f32 %v2823_v35, %v5037_v4  ;;  %v2825_v20 = vpop.f32.mrb[101].mxu1  ;;  %v2938_v27 = vpop.f32.mrb[133].mxu0 }
 0x539   : > { %v2826_v36 = vadd.f32 %v2825_v20, %v5040_v12  ;;  %v2827_v29 = vpop.f32.mrb[102].mxu1  ;;  %v2940_v38 = vpop.f32.mrb[134].mxu0 }
 0x53a   : > { %v2937_v39 = vadd.f32 %v2936_v54, %v2824_v55  ;;  %v2828_v26 = vadd.f32 %v2827_v29, %v5037_v4  ;;  %v2829_v57 = vpop.f32.mrb[103].mxu1  ;;  %v2942_v58 = vpop.f32.mrb[135].mxu0 }
 0x53b   : > { %v2939_v33 = vadd.f32 %v2938_v27, %v2826_v36  ;;  %v2830_v50 = vadd.f32 %v2829_v57, %v5040_v12 }
 0x53c   : > { %3009 = vst [vmem:[%s5047_s5 + $0x20] sm:$0xff] %v2937_v39  ;;  %v2941_v52 = vadd.f32 %v2940_v38, %v2828_v26 }
 0x53d   : > { %3010 = vst [vmem:[%s5047_s5 + $0x28] sm:$0xff] %v2939_v33  ;;  %v2943_v62 = vadd.f32 %v2942_v58, %v2830_v50 }
 0x53e   : > { %3011 = vst [vmem:[%s5047_s5 + $0x30] sm:$0xff] %v2941_v52 }
 0x53f   : > { %3012 = vst [vmem:[%s5047_s5 + $0x38] sm:$0xff] %v2943_v62  ;;  %v2833_v63 = vpop.f32.mrb[104].mxu1  ;;  %v2946_v46 = vpop.f32.mrb[136].mxu0 }
 0x540   : > { %v2834_v48 = vadd.f32 %v2833_v63, %v5037_v4  ;;  %v2835_v2 = vpop.f32.mrb[105].mxu1  ;;  %v2948_v3 = vpop.f32.mrb[137].mxu0 }
 0x541   : > { %v2836_v42 = vadd.f32 %v2835_v2, %v5040_v12  ;;  %v2837_v44 = vpop.f32.mrb[106].mxu1  ;;  %v2950_v5 = vpop.f32.mrb[138].mxu0 }
 0x542   : > { %v2947_v9 = vadd.f32 %v2946_v46, %v2834_v48  ;;  %v2838_v0 = vadd.f32 %v2837_v44, %v5037_v4  ;;  %v2839_v37 = vpop.f32.mrb[107].mxu1  ;;  %v2952_v11 = vpop.f32.mrb[139].mxu0 }
 0x543   : > { %v2949_v56 = vadd.f32 %v2948_v3, %v2836_v42  ;;  %v2840_v1 = vadd.f32 %v2839_v37, %v5040_v12 }
 0x544   : > { %3013 = vst [vmem:[%s5047_s5 + $0x40] sm:$0xff] %v2947_v9  ;;  %v2951_v14 = vadd.f32 %v2950_v5, %v2838_v0 }
 0x545   : > { %3014 = vst [vmem:[%s5047_s5 + $0x48] sm:$0xff] %v2949_v56  ;;  %v2953_v16 = vadd.f32 %v2952_v11, %v2840_v1 }
 0x546   : > { %3015 = vst [vmem:[%s5047_s5 + $0x50] sm:$0xff] %v2951_v14 }
 0x547   : > { %3016 = vst [vmem:[%s5047_s5 + $0x58] sm:$0xff] %v2953_v16  ;;  %v2843_v19 = vpop.f32.mrb[108].mxu1  ;;  %v2956_v31 = vpop.f32.mrb[140].mxu0 }
 0x548   : > { %v2844_v18 = vadd.f32 %v2843_v19, %v5037_v4  ;;  %v2845_v21 = vpop.f32.mrb[109].mxu1  ;;  %v2958_v34 = vpop.f32.mrb[141].mxu0 }
 0x549   : > { %v2846_v61 = vadd.f32 %v2845_v21, %v5040_v12  ;;  %v2847_v59 = vpop.f32.mrb[110].mxu1  ;;  %v2960_v60 = vpop.f32.mrb[142].mxu0 }
 0x54a   : > { %v2957_v43 = vadd.f32 %v2956_v31, %v2844_v18  ;;  %v2848_v45 = vadd.f32 %v2847_v59, %v5037_v4  ;;  %v2849_v53 = vpop.f32.mrb[111].mxu1  ;;  %v2962_v47 = vpop.f32.mrb[143].mxu0 }
 0x54b   : > { %v2959_v49 = vadd.f32 %v2958_v34, %v2846_v61  ;;  %v2850_v28 = vadd.f32 %v2849_v53, %v5040_v12 }
 0x54c   : > { %3017 = vst [vmem:[%s5047_s5 + $0x60] sm:$0xff] %v2957_v43  ;;  %v2961_v13 = vadd.f32 %v2960_v60, %v2848_v45 }
 0x54d   : > { %3018 = vst [vmem:[%s5047_s5 + $0x68] sm:$0xff] %v2959_v49  ;;  %v2963_v22 = vadd.f32 %v2962_v47, %v2850_v28 }
 0x54e   : > { %3019 = vst [vmem:[%s5047_s5 + $0x70] sm:$0xff] %v2961_v13 }
 0x54f   : > { %3020 = vst [vmem:[%s5047_s5 + $0x78] sm:$0xff] %v2963_v22  ;;  %v2853_v15 = vpop.f32.mrb[112].mxu1  ;;  %v2966_v24 = vpop.f32.mrb[144].mxu0 }
 0x550   : > { %v2854_v17 = vadd.f32 %v2853_v15, %v5037_v4  ;;  %v2855_v40 = vpop.f32.mrb[113].mxu1  ;;  %v2968_v41 = vpop.f32.mrb[145].mxu0 }
 0x551   : > { %v2856_v7 = vadd.f32 %v2855_v40, %v5040_v12  ;;  %v2857_v10 = vpop.f32.mrb[114].mxu1  ;;  %v2970_v25 = vpop.f32.mrb[146].mxu0 }
 0x552   : > { %v2967_v6 = vadd.f32 %v2966_v24, %v2854_v17  ;;  %v2858_v30 = vadd.f32 %v2857_v10, %v5037_v4  ;;  %v2859_v8 = vpop.f32.mrb[115].mxu1  ;;  %v2972_v32 = vpop.f32.mrb[147].mxu0 }
 0x553   : > { %v2969_v51 = vadd.f32 %v2968_v41, %v2856_v7  ;;  %v2860_v23 = vadd.f32 %v2859_v8, %v5040_v12 }
 0x554   : > { %3021 = vst [vmem:[%s5047_s5 + $0x80] sm:$0xff] %v2967_v6  ;;  %v2971_v35 = vadd.f32 %v2970_v25, %v2858_v30 }
 0x555   : > { %3022 = vst [vmem:[%s5047_s5 + $0x88] sm:$0xff] %v2969_v51  ;;  %v2973_v54 = vadd.f32 %v2972_v32, %v2860_v23 }
 0x556   : > { %3023 = vst [vmem:[%s5047_s5 + $0x90] sm:$0xff] %v2971_v35 }
 0x557   : > { %3024 = vst [vmem:[%s5047_s5 + $0x98] sm:$0xff] %v2973_v54  ;;  %v2863_v55 = vpop.f32.mrb[116].mxu1  ;;  %v2976_v20 = vpop.f32.mrb[148].mxu0 }
 0x558   : > { %v2864_v27 = vadd.f32 %v2863_v55, %v5037_v4  ;;  %v2865_v36 = vpop.f32.mrb[117].mxu1  ;;  %v2978_v29 = vpop.f32.mrb[149].mxu0 }
 0x559   : > { %v2866_v38 = vadd.f32 %v2865_v36, %v5040_v12  ;;  %v2867_v39 = vpop.f32.mrb[118].mxu1  ;;  %v2980_v26 = vpop.f32.mrb[150].mxu0 }
 0x55a   : > { %v2977_v57 = vadd.f32 %v2976_v20, %v2864_v27  ;;  %v2868_v58 = vadd.f32 %v2867_v39, %v5037_v4  ;;  %v2869_v33 = vpop.f32.mrb[119].mxu1  ;;  %v2982_v50 = vpop.f32.mrb[151].mxu0 }
 0x55b   : > { %v2979_v52 = vadd.f32 %v2978_v29, %v2866_v38  ;;  %v2870_v62 = vadd.f32 %v2869_v33, %v5040_v12 }
 0x55c   : > { %3025 = vst [vmem:[%s5047_s5 + $0xa0] sm:$0xff] %v2977_v57  ;;  %v2981_v63 = vadd.f32 %v2980_v26, %v2868_v58 }
 0x55d   : > { %3026 = vst [vmem:[%s5047_s5 + $0xa8] sm:$0xff] %v2979_v52  ;;  %v2983_v46 = vadd.f32 %v2982_v50, %v2870_v62 }
 0x55e   : > { %3027 = vst [vmem:[%s5047_s5 + $0xb0] sm:$0xff] %v2981_v63 }
 0x55f   : > { %3028 = vst [vmem:[%s5047_s5 + $0xb8] sm:$0xff] %v2983_v46 }
 0x56f   : > { %v2986_v48 = vpop.f32.mrb[120].mxu1 }
 0x570   : > { %v3626_v2 = vadd.f32 %v2986_v48, %v5037_v4  ;;  %v2988_v3 = vpop.f32.mrb[121].mxu1 }
 0x571   : > { %v3627_v42 = vadd.f32 %v2988_v3, %v5040_v12  ;;  %v2990_v44 = vpop.f32.mrb[122].mxu1 }
 0x572   : > { %3029 = vst [vmem:[%s5047_s5 + $0xc0] sm:$0xff] %v3626_v2  ;;  %v3628_v5 = vadd.f32 %v2990_v44, %v5037_v4  ;;  %v2992_v9 = vpop.f32.mrb[123].mxu1 }
 0x573   : > { %3030 = vst [vmem:[%s5047_s5 + $0xc8] sm:$0xff] %v3627_v42  ;;  %v3629_v0 = vadd.f32 %v2992_v9, %v5040_v12 }
 0x574   : > { %3031 = vst [vmem:[%s5047_s5 + $0xd0] sm:$0xff] %v3628_v5 }
 0x575   : > { %3032 = vst [vmem:[%s5047_s5 + $0xd8] sm:$0xff] %v3629_v0 }
 0x577   : > { %v2996_v37 = vpop.f32.mrb[124].mxu1 }
 0x578   : > { %v3630_v11 = vadd.f32 %v2996_v37, %v5037_v4  ;;  %v2998_v56 = vpop.f32.mrb[125].mxu1 }
 0x579   : > { %v3631_v1 = vadd.f32 %v2998_v56, %v5040_v12  ;;  %v3000_v14 = vpop.f32.mrb[126].mxu1 }
 0x57a   : > { %3033 = vst [vmem:[%s5047_s5 + $0xe0] sm:$0xff] %v3630_v11  ;;  %v3632_v16 = vadd.f32 %v3000_v14, %v5037_v4  ;;  %v3002_v19 = vpop.f32.mrb[127].mxu1 }
 0x57b   : > { %3034 = vst [vmem:[%s5047_s5 + $0xe8] sm:$0xff] %v3631_v1  ;;  %v3633_v31 = vadd.f32 %v3002_v19, %v5040_v12 }
 0x57c   : > { %3035 = vst [vmem:[%s5047_s5 + $0xf0] sm:$0xff] %v3632_v16 }
 0x57d   : > { %3036 = vst [vmem:[%s5047_s5 + $0xf8] sm:$0xff] %v3633_v31 }
 0x57e   : > { %4235 = shalt.err (!%p4232_p8)
}
 0x57f   : > { %s4236_s12 = scalar_lea.hbm %s5110_s10, 4096  ;;  %s4240_s5 = scalar_lea.hbm %s5208_s21, 8192 }
 0x580   : > { %p4237_p6 = scmp.ne.s32.totalorder %s5110_s10, %s4236_s12  ;;  %p4241_p3 = scmp.lt.u32.totalorder %s5110_s10, %s5208_s21 }
 0x581   : > { %p4242_p0 = scmp.lt.u32.totalorder %s4240_s5, %s4236_s12  ;;  %p4244_p2 = scmp.lt.u32.totalorder %s4236_s12, %s5110_s10 }
 0x582   : > { %p4238_p9 = pnand %p4237_p6, %p5209_p7 }
 0x583   : > { %p4243_p5 = por %p4242_p0, %p4241_p3 }
 0x584   : > { %p4239_p4 = pneg %p4238_p9 }
 0x585   : > { %p4245_p10 = por %p4244_p2, %p4243_p5 }
 0x587   : > { %p4246_p1 = pnand %p4245_p10, %p4239_p4 }
 0x589   : > { %4249 = shalt.err (!%p4246_p1)
}
 0x58a   : > { %s4316_s13 = smov 256   ;;  %s4317_s25 = smov 16  }
 0x58b   : > { %3664 = dma.vmem_to_hbm [thread:$0]  (%p5209_p7), %s5112_s1, 4096, %s5110_s10, %s3038_s23, %s4316_s13, %s4316_s13, %s4317_s25  }
 0x58c PF: > { %s3067_s26 = sand.u32 1, %s4288_s17   ;;  %p5210_p11 = scmp.ne.s32.totalorder %s5195_s8, 0 }
 0x58d   : > { %p5211_p12 = scmp.ge.s32.totalorder %s4300_s20, 2  ;;  %s3068_s29 = scalar_lea.sflag [#allocation4], %s3067_s26 }
 0x58f   : > { %p3687_p13 = pnand %p5211_p12, %p5210_p11 }
 0x591   : > { %4283 = dma.done.wait (!%p3687_p13), %s3068_s29, 4096  }
 0x592   : > { %4285 = vsyncadd (!%p3687_p13), %s3068_s29, 4294963200  ;;  %p27_p8 = scmp.ge.s32.totalorder %s4541_s16, 4   ;;  %s5212_s17 = smov %s4292_s18 }
 0x593   : > { %s5213_s18 = smov %s4296_s19  ;;  %s5214_s19 = smov %s4553_s11 }
 0x594   : > { %s5215_s20 = smov %s4541_s16  ;;  %29 = sbr.rel (!%p27_p8) target bundleno = 14 (0xe), region = 129 }
 0x59b   :  { %3073 = vsyncpa [#allocation3], 1 }
 0x59c   :  { %3075 = vsyncpa [#allocation3 + $0x1], 1 }
 0x59d   :  { %3076 = vsyncpa [#allocation6], 1 }
 0x59e   :  { %3077 = vsyncpa [#allocation9], 1 }
 0x59f   :  { %3078 = vsyncpa [#allocation12], 1 }
 0x5a0   :  { %3079 = vsyncpa [#allocation4], 1 }
 0x5a1   :  { %3081 = vsyncpa [#allocation4 + $0x1], 1 }

</bundles_post_ra>
